<compile_context>
chip_gen: v7x
topology: tpu7x:2x2x1
jax: 0.10.0
libtpu: 0.0.40
codegen_flags: <defaults>
</compile_context>

<pallas_src>
import functools

import numpy as np
import jax
import jax.numpy as jnp
from jax.experimental import pallas as pl
from jax.experimental.pallas import tpu as pltpu


# ----------------------------- schedule (host-side, like __init__) ----------
def cosine_beta_schedule(timesteps, s=0.008):
    steps = timesteps + 1
    x = np.linspace(0, steps, steps)
    alphas_cumprod = np.cos((x / steps + s) / (1 + s) * np.pi * 0.5) ** 2
    alphas_cumprod = alphas_cumprod / alphas_cumprod[0]
    betas = 1 - alphas_cumprod[1:] / alphas_cumprod[:-1]
    return np.clip(betas, a_min=0, a_max=0.999)


def sinusoidal_time_embedding(timesteps, dim):
    """Deterministic time-embedding table, shape (timesteps, dim)."""
    t = np.arange(timesteps, dtype=np.float32)[:, None]          # (T, 1)
    half = dim // 2
    freqs = np.exp(-np.log(10000.0) * np.arange(half) / max(half - 1, 1))
    args = t * freqs[None, :]                                     # (T, half)
    return np.concatenate([np.sin(args), np.cos(args)], axis=1).astype(np.float32)


# ----------------------------- Pallas kernel --------------------------------
def diffusion_loss_kernel(x_ref, noise_ref, ca_ref, cb_ref, temb_ref,
                          w1t_ref, w2t_ref, b2t_ref, out_ref, *, inv_n):
    """Single-invocation diffusion-loss kernel, transposed layout.

    Shapes (P = B*H*W, lane axis; C / hidden on sublanes):
      x_ref, noise_ref : (C, P)        f32   image / noise
      ca_ref, cb_ref   : (1, P)        f32   q_sample coefficients per lane
      temb_ref         : (hidden, P)   f32   time-embedding bias (b1 folded in)
      w1t_ref          : (hidden, C)   f32   denoiser first projection (W1^T)
      w2t_ref          : (C, hidden)   f32   denoiser second projection (W2^T)
      b2t_ref          : (C, 1)        f32   output bias
      out_ref          : (1, 1) SMEM   f32   mean L1 loss
    """
    x = x_ref[...]                         # (C, P)
    noise = noise_ref[...]                 # (C, P)
    C, P = x.shape
    hidden = temb_ref.shape[0]

    # q_sample: x_noisy = a_t * x + sqrt(1 - acp_t) * noise  (x_hat == 0)
    # per-lane coefficient rows broadcast over the C sublanes (pure VPU).
    x_noisy = ca_ref[...] * x + cb_ref[...] * noise            # (C, P)

    # denoise_fn, first projection: h[j, p] = sum_c W1[c, j] * x_noisy[c, p]
    # K = C = 4  -> keep it OFF the MXU: C broadcast FMAs on the VPU.
    # Accumulator is initialized with the time-embedding bias (b1 folded in).
    w1_t = w1t_ref[...]                                        # (hidden, C)
    h = temb_ref[...]                                          # (hidden, P)
    for c in range(C):                                         # static unroll
        h = h + w1_t[:, c:c + 1] * x_noisy[c:c + 1, :]
    h = h * jax.nn.sigmoid(h)                                  # SiLU (EUP)

    # second projection: recon[c, p] = b2[c] + sum_j W2[j, c] * h[j, p]
    # output dim C = 4 -> `hidden` broadcast FMAs on the VPU (no MXU).
    w2_t = w2t_ref[...]                                        # (C, hidden)
    recon = jnp.broadcast_to(b2t_ref[...], (C, P))             # (C, P)
    for j in range(hidden):                                    # static unroll
        recon = recon + w2_t[:, j:j + 1] * h[j:j + 1, :]

    # l1 loss: fully reduced in-kernel, single scalar SMEM store.
    out_ref[0, 0] = jnp.sum(jnp.abs(noise - recon)) * inv_n


def gaussian_diffusion_loss(x_nchw, noise_nchw, t, schedule, params):
    """Computes the l1 diffusion training loss with the Pallas kernel."""
    B, C, H, W = x_nchw.shape
    HW = H * W
    P = B * HW
    hidden = params["w1"].shape[1]
    assert P % 128 == 0, "flattened batch*pixel axis must be lane-aligned"

    # NCHW -> (C, B*H*W): channels on sublanes, flattened batch*pixels on the
    # lane axis (lane-dense; p = b*HW + h*W + w).
    x_t = jnp.transpose(x_nchw, (1, 0, 2, 3)).reshape(C, P).astype(jnp.float32)
    n_t = jnp.transpose(noise_nchw, (1, 0, 2, 3)).reshape(C, P).astype(jnp.float32)

    # "extract(a, t, shape)": per-batch scalars expanded to per-lane rows (1,P).
    ca = jnp.repeat(schedule["sqrt_alphas_cumprod"][t].astype(jnp.float32), HW)[None, :]
    cb = jnp.repeat(
        schedule["sqrt_one_minus_alphas_cumprod"][t].astype(jnp.float32), HW)[None, :]

    # time-embedding bias with b1 folded in, expanded per lane: (hidden, P).
    temb_b = params["temb_table"][t] + params["b1"]            # (B, hidden)
    temb_t = jnp.repeat(temb_b, HW, axis=0).T                  # (hidden, P)

    w1_t = params["w1"].T                                      # (hidden, C)
    w2_t = params["w2"].T                                      # (C, hidden)
    b2_t = params["b2"].T                                      # (C, 1)

    kernel = functools.partial(
        diffusion_loss_kernel, inv_n=1.0 / float(B * C * H * W))

    out = pl.pallas_call(
        kernel,
        out_shape=jax.ShapeDtypeStruct((1, 1), jnp.float32),
        in_specs=[pl.BlockSpec(memory_space=pltpu.MemorySpace.VMEM)
                  for _ in range(8)],
        out_specs=pl.BlockSpec(memory_space=pltpu.MemorySpace.SMEM),
    )(x_t, n_t, ca, cb, temb_t, w1_t, w2_t, b2_t)

    return out[0, 0]


# ----------------------------- pure-JAX reference ---------------------------
def reference_loss(x_nchw, noise_nchw, t, schedule, params):
    B, C, H, W = x_nchw.shape
    x_f = jnp.transpose(x_nchw, (0, 2, 3, 1)).reshape(B, H * W, C)
    n_f = jnp.transpose(noise_nchw, (0, 2, 3, 1)).reshape(B, H * W, C)
    a = schedule["sqrt_alphas_cumprod"][t][:, None, None]
    s1m = schedule["sqrt_one_minus_alphas_cumprod"][t][:, None, None]
    x_noisy = a * x_f + s1m * n_f
    h = jnp.einsum("bpc,ch->bph", x_noisy, params["w1"]) + params["b1"]
    h = h + params["temb_table"][t][:, None, :]
    h = h * jax.nn.sigmoid(h)
    x_recon = jnp.einsum("bph,hc->bpc", h, params["w2"]) + params["b2"]
    return jnp.mean(jnp.abs(n_f - x_recon))


# ----------------------------- main ------------------------------------------
if __name__ == "__main__":
    B, C, H, W = 2, 4, 16, 16
    hidden = 32
    timesteps = 250

    # schedule buffers (as in GaussianDiffusion.__init__)
    betas = cosine_beta_schedule(timesteps)
    alphas = 1.0 - betas
    alphas_cumprod = np.cumprod(alphas, axis=0)
    schedule = {
        "sqrt_alphas_cumprod": jnp.asarray(np.sqrt(alphas_cumprod), jnp.float32),
        "sqrt_one_minus_alphas_cumprod": jnp.asarray(
            np.sqrt(1.0 - alphas_cumprod), jnp.float32),
    }

    # deterministic synthetic denoise_fn parameters
    # TODO(synk): the real denoise_fn is an external 3D UNet; a per-pixel MLP
    # with an additive time embedding stands in for it here.
    key = jax.random.PRNGKey(0)
    k_x, k_t, k_n, k_w1, k_w2 = jax.random.split(key, 5)
    params = {
        "w1": (jax.random.normal(k_w1, (C, hidden), jnp.float32) * 0.2),
        "b1": jnp.zeros((1, hidden), jnp.float32),
        "w2": (jax.random.normal(k_w2, (hidden, C), jnp.float32) * 0.2),
        "b2": jnp.zeros((1, C), jnp.float32),
        "temb_table": jnp.asarray(
            sinusoidal_time_embedding(timesteps, hidden) * 0.1),
    }

    # forward(): x in NCHW, random t, random noise (RNG done host/JAX-side)
    x = jax.random.normal(k_x, (B, C, H, W), jnp.float32)
    t = jax.random.randint(k_t, (B,), 0, timesteps)
    noise = jax.random.normal(k_n, (B, C, H, W), jnp.float32)

    loss = gaussian_diffusion_loss(x, noise, t, schedule, params)
    loss = jax.block_until_ready(loss)

    ref = jax.block_until_ready(reference_loss(x, noise, t, schedule, params))
    assert np.allclose(np.asarray(loss), np.asarray(ref), rtol=1e-4, atol=1e-5), \
        (loss, ref)

    print("KERNEL_OK")
</pallas_src>

<mosaic_0001>
module attributes {stable_mosaic.version = 11 : i64} {
  func.func @diffusion_loss_kernel(%arg0: memref<4x512xf32, #tpu.memory_space<vmem>>, %arg1: memref<4x512xf32, #tpu.memory_space<vmem>>, %arg2: memref<1x512xf32, #tpu.memory_space<vmem>>, %arg3: memref<1x512xf32, #tpu.memory_space<vmem>>, %arg4: memref<32x512xf32, #tpu.memory_space<vmem>>, %arg5: memref<32x4xf32, #tpu.memory_space<vmem>>, %arg6: memref<4x32xf32, #tpu.memory_space<vmem>>, %arg7: memref<4x1xf32, #tpu.memory_space<vmem>>, %arg8: memref<1x1xf32, #tpu.memory_space<smem>>) attributes {dimension_semantics = [], scalar_prefetch = 0 : i64, scratch_operands = 0 : i64, tpu.core_type = #tpu.core_type<tc>} {
    %c0 = arith.constant 0 : index
    %c0_0 = arith.constant 0 : index
    %0 = vector.load %arg0[%c0, %c0_0] : memref<4x512xf32, #tpu.memory_space<vmem>>, vector<4x512xf32>
    %c0_1 = arith.constant 0 : index
    %c0_2 = arith.constant 0 : index
    %1 = vector.load %arg1[%c0_1, %c0_2] : memref<4x512xf32, #tpu.memory_space<vmem>>, vector<4x512xf32>
    %c0_3 = arith.constant 0 : index
    %c0_4 = arith.constant 0 : index
    %2 = vector.load %arg2[%c0_3, %c0_4] : memref<1x512xf32, #tpu.memory_space<vmem>>, vector<1x512xf32>
    %3 = vector.broadcast %2 : vector<1x512xf32> to vector<4x512xf32>
    %4 = arith.mulf %3, %0 : vector<4x512xf32>
    %c0_5 = arith.constant 0 : index
    %c0_6 = arith.constant 0 : index
    %5 = vector.load %arg3[%c0_5, %c0_6] : memref<1x512xf32, #tpu.memory_space<vmem>>, vector<1x512xf32>
    %6 = vector.broadcast %5 : vector<1x512xf32> to vector<4x512xf32>
    %7 = arith.mulf %6, %1 : vector<4x512xf32>
    %8 = arith.addf %4, %7 : vector<4x512xf32>
    %c0_7 = arith.constant 0 : index
    %c0_8 = arith.constant 0 : index
    %9 = vector.load %arg5[%c0_7, %c0_8] : memref<32x4xf32, #tpu.memory_space<vmem>>, vector<32x4xf32>
    %c0_9 = arith.constant 0 : index
    %c0_10 = arith.constant 0 : index
    %10 = vector.load %arg4[%c0_9, %c0_10] : memref<32x512xf32, #tpu.memory_space<vmem>>, vector<32x512xf32>
    %11 = vector.extract_strided_slice %9 {offsets = [0, 0], sizes = [32, 1], strides = [1, 1]} : vector<32x4xf32> to vector<32x1xf32>
    %12 = vector.extract_strided_slice %8 {offsets = [0, 0], sizes = [1, 512], strides = [1, 1]} : vector<4x512xf32> to vector<1x512xf32>
    %13 = vector.broadcast %11 : vector<32x1xf32> to vector<32x512xf32>
    %14 = vector.broadcast %12 : vector<1x512xf32> to vector<32x512xf32>
    %15 = arith.mulf %13, %14 : vector<32x512xf32>
    %16 = arith.addf %10, %15 : vector<32x512xf32>
    %17 = vector.extract_strided_slice %9 {offsets = [0, 1], sizes = [32, 1], strides = [1, 1]} : vector<32x4xf32> to vector<32x1xf32>
    %18 = vector.extract_strided_slice %8 {offsets = [1, 0], sizes = [1, 512], strides = [1, 1]} : vector<4x512xf32> to vector<1x512xf32>
    %19 = vector.broadcast %17 : vector<32x1xf32> to vector<32x512xf32>
    %20 = vector.broadcast %18 : vector<1x512xf32> to vector<32x512xf32>
    %21 = arith.mulf %19, %20 : vector<32x512xf32>
    %22 = arith.addf %16, %21 : vector<32x512xf32>
    %23 = vector.extract_strided_slice %9 {offsets = [0, 2], sizes = [32, 1], strides = [1, 1]} : vector<32x4xf32> to vector<32x1xf32>
    %24 = vector.extract_strided_slice %8 {offsets = [2, 0], sizes = [1, 512], strides = [1, 1]} : vector<4x512xf32> to vector<1x512xf32>
    %25 = vector.broadcast %23 : vector<32x1xf32> to vector<32x512xf32>
    %26 = vector.broadcast %24 : vector<1x512xf32> to vector<32x512xf32>
    %27 = arith.mulf %25, %26 : vector<32x512xf32>
    %28 = arith.addf %22, %27 : vector<32x512xf32>
    %29 = vector.extract_strided_slice %9 {offsets = [0, 3], sizes = [32, 1], strides = [1, 1]} : vector<32x4xf32> to vector<32x1xf32>
    %30 = vector.extract_strided_slice %8 {offsets = [3, 0], sizes = [1, 512], strides = [1, 1]} : vector<4x512xf32> to vector<1x512xf32>
    %31 = vector.broadcast %29 : vector<32x1xf32> to vector<32x512xf32>
    %32 = vector.broadcast %30 : vector<1x512xf32> to vector<32x512xf32>
    %33 = arith.mulf %31, %32 : vector<32x512xf32>
    %34 = arith.addf %28, %33 : vector<32x512xf32>
    %35 = arith.negf %34 : vector<32x512xf32>
    %36 = math.exp %35 : vector<32x512xf32>
    %cst = arith.constant 1.000000e+00 : f32
    %37 = vector.broadcast %cst : f32 to vector<32x512xf32>
    %38 = arith.addf %37, %36 : vector<32x512xf32>
    %39 = arith.divf %37, %38 : vector<32x512xf32>
    %40 = arith.mulf %34, %39 : vector<32x512xf32>
    %c0_11 = arith.constant 0 : index
    %c0_12 = arith.constant 0 : index
    %41 = vector.load %arg6[%c0_11, %c0_12] : memref<4x32xf32, #tpu.memory_space<vmem>>, vector<4x32xf32>
    %c0_13 = arith.constant 0 : index
    %c0_14 = arith.constant 0 : index
    %42 = vector.load %arg7[%c0_13, %c0_14] : memref<4x1xf32, #tpu.memory_space<vmem>>, vector<4x1xf32>
    %43 = vector.shape_cast %42 : vector<4x1xf32> to vector<4x1xf32>
    %44 = vector.broadcast %43 : vector<4x1xf32> to vector<4x512xf32>
    %45 = vector.extract_strided_slice %41 {offsets = [0, 0], sizes = [4, 1], strides = [1, 1]} : vector<4x32xf32> to vector<4x1xf32>
    %46 = vector.extract_strided_slice %40 {offsets = [0, 0], sizes = [1, 512], strides = [1, 1]} : vector<32x512xf32> to vector<1x512xf32>
    %47 = vector.broadcast %45 : vector<4x1xf32> to vector<4x512xf32>
    %48 = vector.broadcast %46 : vector<1x512xf32> to vector<4x512xf32>
    %49 = arith.mulf %47, %48 : vector<4x512xf32>
    %50 = arith.addf %44, %49 : vector<4x512xf32>
    %51 = vector.extract_strided_slice %41 {offsets = [0, 1], sizes = [4, 1], strides = [1, 1]} : vector<4x32xf32> to vector<4x1xf32>
    %52 = vector.extract_strided_slice %40 {offsets = [1, 0], sizes = [1, 512], strides = [1, 1]} : vector<32x512xf32> to vector<1x512xf32>
    %53 = vector.broadcast %51 : vector<4x1xf32> to vector<4x512xf32>
    %54 = vector.broadcast %52 : vector<1x512xf32> to vector<4x512xf32>
    %55 = arith.mulf %53, %54 : vector<4x512xf32>
    %56 = arith.addf %50, %55 : vector<4x512xf32>
    %57 = vector.extract_strided_slice %41 {offsets = [0, 2], sizes = [4, 1], strides = [1, 1]} : vector<4x32xf32> to vector<4x1xf32>
    %58 = vector.extract_strided_slice %40 {offsets = [2, 0], sizes = [1, 512], strides = [1, 1]} : vector<32x512xf32> to vector<1x512xf32>
    %59 = vector.broadcast %57 : vector<4x1xf32> to vector<4x512xf32>
    %60 = vector.broadcast %58 : vector<1x512xf32> to vector<4x512xf32>
    %61 = arith.mulf %59, %60 : vector<4x512xf32>
    %62 = arith.addf %56, %61 : vector<4x512xf32>
    %63 = vector.extract_strided_slice %41 {offsets = [0, 3], sizes = [4, 1], strides = [1, 1]} : vector<4x32xf32> to vector<4x1xf32>
    %64 = vector.extract_strided_slice %40 {offsets = [3, 0], sizes = [1, 512], strides = [1, 1]} : vector<32x512xf32> to vector<1x512xf32>
    %65 = vector.broadcast %63 : vector<4x1xf32> to vector<4x512xf32>
    %66 = vector.broadcast %64 : vector<1x512xf32> to vector<4x512xf32>
    %67 = arith.mulf %65, %66 : vector<4x512xf32>
    %68 = arith.addf %62, %67 : vector<4x512xf32>
    %69 = vector.extract_strided_slice %41 {offsets = [0, 4], sizes = [4, 1], strides = [1, 1]} : vector<4x32xf32> to vector<4x1xf32>
    %70 = vector.extract_strided_slice %40 {offsets = [4, 0], sizes = [1, 512], strides = [1, 1]} : vector<32x512xf32> to vector<1x512xf32>
    %71 = vector.broadcast %69 : vector<4x1xf32> to vector<4x512xf32>
    %72 = vector.broadcast %70 : vector<1x512xf32> to vector<4x512xf32>
    %73 = arith.mulf %71, %72 : vector<4x512xf32>
    %74 = arith.addf %68, %73 : vector<4x512xf32>
    %75 = vector.extract_strided_slice %41 {offsets = [0, 5], sizes = [4, 1], strides = [1, 1]} : vector<4x32xf32> to vector<4x1xf32>
    %76 = vector.extract_strided_slice %40 {offsets = [5, 0], sizes = [1, 512], strides = [1, 1]} : vector<32x512xf32> to vector<1x512xf32>
    %77 = vector.broadcast %75 : vector<4x1xf32> to vector<4x512xf32>
    %78 = vector.broadcast %76 : vector<1x512xf32> to vector<4x512xf32>
    %79 = arith.mulf %77, %78 : vector<4x512xf32>
    %80 = arith.addf %74, %79 : vector<4x512xf32>
    %81 = vector.extract_strided_slice %41 {offsets = [0, 6], sizes = [4, 1], strides = [1, 1]} : vector<4x32xf32> to vector<4x1xf32>
    %82 = vector.extract_strided_slice %40 {offsets = [6, 0], sizes = [1, 512], strides = [1, 1]} : vector<32x512xf32> to vector<1x512xf32>
    %83 = vector.broadcast %81 : vector<4x1xf32> to vector<4x512xf32>
    %84 = vector.broadcast %82 : vector<1x512xf32> to vector<4x512xf32>
    %85 = arith.mulf %83, %84 : vector<4x512xf32>
    %86 = arith.addf %80, %85 : vector<4x512xf32>
    %87 = vector.extract_strided_slice %41 {offsets = [0, 7], sizes = [4, 1], strides = [1, 1]} : vector<4x32xf32> to vector<4x1xf32>
    %88 = vector.extract_strided_slice %40 {offsets = [7, 0], sizes = [1, 512], strides = [1, 1]} : vector<32x512xf32> to vector<1x512xf32>
    %89 = vector.broadcast %87 : vector<4x1xf32> to vector<4x512xf32>
    %90 = vector.broadcast %88 : vector<1x512xf32> to vector<4x512xf32>
    %91 = arith.mulf %89, %90 : vector<4x512xf32>
    %92 = arith.addf %86, %91 : vector<4x512xf32>
    %93 = vector.extract_strided_slice %41 {offsets = [0, 8], sizes = [4, 1], strides = [1, 1]} : vector<4x32xf32> to vector<4x1xf32>
    %94 = vector.extract_strided_slice %40 {offsets = [8, 0], sizes = [1, 512], strides = [1, 1]} : vector<32x512xf32> to vector<1x512xf32>
    %95 = vector.broadcast %93 : vector<4x1xf32> to vector<4x512xf32>
    %96 = vector.broadcast %94 : vector<1x512xf32> to vector<4x512xf32>
    %97 = arith.mulf %95, %96 : vector<4x512xf32>
    %98 = arith.addf %92, %97 : vector<4x512xf32>
    %99 = vector.extract_strided_slice %41 {offsets = [0, 9], sizes = [4, 1], strides = [1, 1]} : vector<4x32xf32> to vector<4x1xf32>
    %100 = vector.extract_strided_slice %40 {offsets = [9, 0], sizes = [1, 512], strides = [1, 1]} : vector<32x512xf32> to vector<1x512xf32>
    %101 = vector.broadcast %99 : vector<4x1xf32> to vector<4x512xf32>
    %102 = vector.broadcast %100 : vector<1x512xf32> to vector<4x512xf32>
    %103 = arith.mulf %101, %102 : vector<4x512xf32>
    %104 = arith.addf %98, %103 : vector<4x512xf32>
    %105 = vector.extract_strided_slice %41 {offsets = [0, 10], sizes = [4, 1], strides = [1, 1]} : vector<4x32xf32> to vector<4x1xf32>
    %106 = vector.extract_strided_slice %40 {offsets = [10, 0], sizes = [1, 512], strides = [1, 1]} : vector<32x512xf32> to vector<1x512xf32>
    %107 = vector.broadcast %105 : vector<4x1xf32> to vector<4x512xf32>
    %108 = vector.broadcast %106 : vector<1x512xf32> to vector<4x512xf32>
    %109 = arith.mulf %107, %108 : vector<4x512xf32>
    %110 = arith.addf %104, %109 : vector<4x512xf32>
    %111 = vector.extract_strided_slice %41 {offsets = [0, 11], sizes = [4, 1], strides = [1, 1]} : vector<4x32xf32> to vector<4x1xf32>
    %112 = vector.extract_strided_slice %40 {offsets = [11, 0], sizes = [1, 512], strides = [1, 1]} : vector<32x512xf32> to vector<1x512xf32>
    %113 = vector.broadcast %111 : vector<4x1xf32> to vector<4x512xf32>
    %114 = vector.broadcast %112 : vector<1x512xf32> to vector<4x512xf32>
    %115 = arith.mulf %113, %114 : vector<4x512xf32>
    %116 = arith.addf %110, %115 : vector<4x512xf32>
    %117 = vector.extract_strided_slice %41 {offsets = [0, 12], sizes = [4, 1], strides = [1, 1]} : vector<4x32xf32> to vector<4x1xf32>
    %118 = vector.extract_strided_slice %40 {offsets = [12, 0], sizes = [1, 512], strides = [1, 1]} : vector<32x512xf32> to vector<1x512xf32>
    %119 = vector.broadcast %117 : vector<4x1xf32> to vector<4x512xf32>
    %120 = vector.broadcast %118 : vector<1x512xf32> to vector<4x512xf32>
    %121 = arith.mulf %119, %120 : vector<4x512xf32>
    %122 = arith.addf %116, %121 : vector<4x512xf32>
    %123 = vector.extract_strided_slice %41 {offsets = [0, 13], sizes = [4, 1], strides = [1, 1]} : vector<4x32xf32> to vector<4x1xf32>
    %124 = vector.extract_strided_slice %40 {offsets = [13, 0], sizes = [1, 512], strides = [1, 1]} : vector<32x512xf32> to vector<1x512xf32>
    %125 = vector.broadcast %123 : vector<4x1xf32> to vector<4x512xf32>
    %126 = vector.broadcast %124 : vector<1x512xf32> to vector<4x512xf32>
    %127 = arith.mulf %125, %126 : vector<4x512xf32>
    %128 = arith.addf %122, %127 : vector<4x512xf32>
    %129 = vector.extract_strided_slice %41 {offsets = [0, 14], sizes = [4, 1], strides = [1, 1]} : vector<4x32xf32> to vector<4x1xf32>
    %130 = vector.extract_strided_slice %40 {offsets = [14, 0], sizes = [1, 512], strides = [1, 1]} : vector<32x512xf32> to vector<1x512xf32>
    %131 = vector.broadcast %129 : vector<4x1xf32> to vector<4x512xf32>
    %132 = vector.broadcast %130 : vector<1x512xf32> to vector<4x512xf32>
    %133 = arith.mulf %131, %132 : vector<4x512xf32>
    %134 = arith.addf %128, %133 : vector<4x512xf32>
    %135 = vector.extract_strided_slice %41 {offsets = [0, 15], sizes = [4, 1], strides = [1, 1]} : vector<4x32xf32> to vector<4x1xf32>
    %136 = vector.extract_strided_slice %40 {offsets = [15, 0], sizes = [1, 512], strides = [1, 1]} : vector<32x512xf32> to vector<1x512xf32>
    %137 = vector.broadcast %135 : vector<4x1xf32> to vector<4x512xf32>
    %138 = vector.broadcast %136 : vector<1x512xf32> to vector<4x512xf32>
    %139 = arith.mulf %137, %138 : vector<4x512xf32>
    %140 = arith.addf %134, %139 : vector<4x512xf32>
    %141 = vector.extract_strided_slice %41 {offsets = [0, 16], sizes = [4, 1], strides = [1, 1]} : vector<4x32xf32> to vector<4x1xf32>
    %142 = vector.extract_strided_slice %40 {offsets = [16, 0], sizes = [1, 512], strides = [1, 1]} : vector<32x512xf32> to vector<1x512xf32>
    %143 = vector.broadcast %141 : vector<4x1xf32> to vector<4x512xf32>
    %144 = vector.broadcast %142 : vector<1x512xf32> to vector<4x512xf32>
    %145 = arith.mulf %143, %144 : vector<4x512xf32>
    %146 = arith.addf %140, %145 : vector<4x512xf32>
    %147 = vector.extract_strided_slice %41 {offsets = [0, 17], sizes = [4, 1], strides = [1, 1]} : vector<4x32xf32> to vector<4x1xf32>
    %148 = vector.extract_strided_slice %40 {offsets = [17, 0], sizes = [1, 512], strides = [1, 1]} : vector<32x512xf32> to vector<1x512xf32>
    %149 = vector.broadcast %147 : vector<4x1xf32> to vector<4x512xf32>
    %150 = vector.broadcast %148 : vector<1x512xf32> to vector<4x512xf32>
    %151 = arith.mulf %149, %150 : vector<4x512xf32>
    %152 = arith.addf %146, %151 : vector<4x512xf32>
    %153 = vector.extract_strided_slice %41 {offsets = [0, 18], sizes = [4, 1], strides = [1, 1]} : vector<4x32xf32> to vector<4x1xf32>
    %154 = vector.extract_strided_slice %40 {offsets = [18, 0], sizes = [1, 512], strides = [1, 1]} : vector<32x512xf32> to vector<1x512xf32>
    %155 = vector.broadcast %153 : vector<4x1xf32> to vector<4x512xf32>
    %156 = vector.broadcast %154 : vector<1x512xf32> to vector<4x512xf32>
    %157 = arith.mulf %155, %156 : vector<4x512xf32>
    %158 = arith.addf %152, %157 : vector<4x512xf32>
    %159 = vector.extract_strided_slice %41 {offsets = [0, 19], sizes = [4, 1], strides = [1, 1]} : vector<4x32xf32> to vector<4x1xf32>
    %160 = vector.extract_strided_slice %40 {offsets = [19, 0], sizes = [1, 512], strides = [1, 1]} : vector<32x512xf32> to vector<1x512xf32>
    %161 = vector.broadcast %159 : vector<4x1xf32> to vector<4x512xf32>
    %162 = vector.broadcast %160 : vector<1x512xf32> to vector<4x512xf32>
    %163 = arith.mulf %161, %162 : vector<4x512xf32>
    %164 = arith.addf %158, %163 : vector<4x512xf32>
    %165 = vector.extract_strided_slice %41 {offsets = [0, 20], sizes = [4, 1], strides = [1, 1]} : vector<4x32xf32> to vector<4x1xf32>
    %166 = vector.extract_strided_slice %40 {offsets = [20, 0], sizes = [1, 512], strides = [1, 1]} : vector<32x512xf32> to vector<1x512xf32>
    %167 = vector.broadcast %165 : vector<4x1xf32> to vector<4x512xf32>
    %168 = vector.broadcast %166 : vector<1x512xf32> to vector<4x512xf32>
    %169 = arith.mulf %167, %168 : vector<4x512xf32>
    %170 = arith.addf %164, %169 : vector<4x512xf32>
    %171 = vector.extract_strided_slice %41 {offsets = [0, 21], sizes = [4, 1], strides = [1, 1]} : vector<4x32xf32> to vector<4x1xf32>
    %172 = vector.extract_strided_slice %40 {offsets = [21, 0], sizes = [1, 512], strides = [1, 1]} : vector<32x512xf32> to vector<1x512xf32>
    %173 = vector.broadcast %171 : vector<4x1xf32> to vector<4x512xf32>
    %174 = vector.broadcast %172 : vector<1x512xf32> to vector<4x512xf32>
    %175 = arith.mulf %173, %174 : vector<4x512xf32>
    %176 = arith.addf %170, %175 : vector<4x512xf32>
    %177 = vector.extract_strided_slice %41 {offsets = [0, 22], sizes = [4, 1], strides = [1, 1]} : vector<4x32xf32> to vector<4x1xf32>
    %178 = vector.extract_strided_slice %40 {offsets = [22, 0], sizes = [1, 512], strides = [1, 1]} : vector<32x512xf32> to vector<1x512xf32>
    %179 = vector.broadcast %177 : vector<4x1xf32> to vector<4x512xf32>
    %180 = vector.broadcast %178 : vector<1x512xf32> to vector<4x512xf32>
    %181 = arith.mulf %179, %180 : vector<4x512xf32>
    %182 = arith.addf %176, %181 : vector<4x512xf32>
    %183 = vector.extract_strided_slice %41 {offsets = [0, 23], sizes = [4, 1], strides = [1, 1]} : vector<4x32xf32> to vector<4x1xf32>
    %184 = vector.extract_strided_slice %40 {offsets = [23, 0], sizes = [1, 512], strides = [1, 1]} : vector<32x512xf32> to vector<1x512xf32>
    %185 = vector.broadcast %183 : vector<4x1xf32> to vector<4x512xf32>
    %186 = vector.broadcast %184 : vector<1x512xf32> to vector<4x512xf32>
    %187 = arith.mulf %185, %186 : vector<4x512xf32>
    %188 = arith.addf %182, %187 : vector<4x512xf32>
    %189 = vector.extract_strided_slice %41 {offsets = [0, 24], sizes = [4, 1], strides = [1, 1]} : vector<4x32xf32> to vector<4x1xf32>
    %190 = vector.extract_strided_slice %40 {offsets = [24, 0], sizes = [1, 512], strides = [1, 1]} : vector<32x512xf32> to vector<1x512xf32>
    %191 = vector.broadcast %189 : vector<4x1xf32> to vector<4x512xf32>
    %192 = vector.broadcast %190 : vector<1x512xf32> to vector<4x512xf32>
    %193 = arith.mulf %191, %192 : vector<4x512xf32>
    %194 = arith.addf %188, %193 : vector<4x512xf32>
    %195 = vector.extract_strided_slice %41 {offsets = [0, 25], sizes = [4, 1], strides = [1, 1]} : vector<4x32xf32> to vector<4x1xf32>
    %196 = vector.extract_strided_slice %40 {offsets = [25, 0], sizes = [1, 512], strides = [1, 1]} : vector<32x512xf32> to vector<1x512xf32>
    %197 = vector.broadcast %195 : vector<4x1xf32> to vector<4x512xf32>
    %198 = vector.broadcast %196 : vector<1x512xf32> to vector<4x512xf32>
    %199 = arith.mulf %197, %198 : vector<4x512xf32>
    %200 = arith.addf %194, %199 : vector<4x512xf32>
    %201 = vector.extract_strided_slice %41 {offsets = [0, 26], sizes = [4, 1], strides = [1, 1]} : vector<4x32xf32> to vector<4x1xf32>
    %202 = vector.extract_strided_slice %40 {offsets = [26, 0], sizes = [1, 512], strides = [1, 1]} : vector<32x512xf32> to vector<1x512xf32>
    %203 = vector.broadcast %201 : vector<4x1xf32> to vector<4x512xf32>
    %204 = vector.broadcast %202 : vector<1x512xf32> to vector<4x512xf32>
    %205 = arith.mulf %203, %204 : vector<4x512xf32>
    %206 = arith.addf %200, %205 : vector<4x512xf32>
    %207 = vector.extract_strided_slice %41 {offsets = [0, 27], sizes = [4, 1], strides = [1, 1]} : vector<4x32xf32> to vector<4x1xf32>
    %208 = vector.extract_strided_slice %40 {offsets = [27, 0], sizes = [1, 512], strides = [1, 1]} : vector<32x512xf32> to vector<1x512xf32>
    %209 = vector.broadcast %207 : vector<4x1xf32> to vector<4x512xf32>
    %210 = vector.broadcast %208 : vector<1x512xf32> to vector<4x512xf32>
    %211 = arith.mulf %209, %210 : vector<4x512xf32>
    %212 = arith.addf %206, %211 : vector<4x512xf32>
    %213 = vector.extract_strided_slice %41 {offsets = [0, 28], sizes = [4, 1], strides = [1, 1]} : vector<4x32xf32> to vector<4x1xf32>
    %214 = vector.extract_strided_slice %40 {offsets = [28, 0], sizes = [1, 512], strides = [1, 1]} : vector<32x512xf32> to vector<1x512xf32>
    %215 = vector.broadcast %213 : vector<4x1xf32> to vector<4x512xf32>
    %216 = vector.broadcast %214 : vector<1x512xf32> to vector<4x512xf32>
    %217 = arith.mulf %215, %216 : vector<4x512xf32>
    %218 = arith.addf %212, %217 : vector<4x512xf32>
    %219 = vector.extract_strided_slice %41 {offsets = [0, 29], sizes = [4, 1], strides = [1, 1]} : vector<4x32xf32> to vector<4x1xf32>
    %220 = vector.extract_strided_slice %40 {offsets = [29, 0], sizes = [1, 512], strides = [1, 1]} : vector<32x512xf32> to vector<1x512xf32>
    %221 = vector.broadcast %219 : vector<4x1xf32> to vector<4x512xf32>
    %222 = vector.broadcast %220 : vector<1x512xf32> to vector<4x512xf32>
    %223 = arith.mulf %221, %222 : vector<4x512xf32>
    %224 = arith.addf %218, %223 : vector<4x512xf32>
    %225 = vector.extract_strided_slice %41 {offsets = [0, 30], sizes = [4, 1], strides = [1, 1]} : vector<4x32xf32> to vector<4x1xf32>
    %226 = vector.extract_strided_slice %40 {offsets = [30, 0], sizes = [1, 512], strides = [1, 1]} : vector<32x512xf32> to vector<1x512xf32>
    %227 = vector.broadcast %225 : vector<4x1xf32> to vector<4x512xf32>
    %228 = vector.broadcast %226 : vector<1x512xf32> to vector<4x512xf32>
    %229 = arith.mulf %227, %228 : vector<4x512xf32>
    %230 = arith.addf %224, %229 : vector<4x512xf32>
    %231 = vector.extract_strided_slice %41 {offsets = [0, 31], sizes = [4, 1], strides = [1, 1]} : vector<4x32xf32> to vector<4x1xf32>
    %232 = vector.extract_strided_slice %40 {offsets = [31, 0], sizes = [1, 512], strides = [1, 1]} : vector<32x512xf32> to vector<1x512xf32>
    %233 = vector.broadcast %231 : vector<4x1xf32> to vector<4x512xf32>
    %234 = vector.broadcast %232 : vector<1x512xf32> to vector<4x512xf32>
    %235 = arith.mulf %233, %234 : vector<4x512xf32>
    %236 = arith.addf %230, %235 : vector<4x512xf32>
    %237 = arith.subf %1, %236 : vector<4x512xf32>
    %238 = math.absf %237 : vector<4x512xf32>
    %239 = vector.shape_cast %238 : vector<4x512xf32> to vector<1x4x512xf32>
    %cst_15 = arith.constant dense<0.000000e+00> : vector<1xf32>
    %240 = vector.multi_reduction <add>, %239, %cst_15 [1, 2] : vector<1x4x512xf32> to vector<1xf32>
    %241 = vector.shape_cast %240 : vector<1xf32> to vector<1x1x1xf32>
    %242 = vector.extract %241[0, 0, 0] : f32 from vector<1x1x1xf32>
    %cst_16 = arith.constant 4.8828125E-4 : f32
    %243 = arith.mulf %242, %cst_16 : f32
    %c0_17 = arith.constant 0 : index
    %c0_18 = arith.constant 0 : index
    %244 = memref.load %arg8[%c0_17, %c0_18] : memref<1x1xf32, #tpu.memory_space<smem>>
    memref.store %243, %arg8[%c0_17, %c0_18] : memref<1x1xf32, #tpu.memory_space<smem>>
    return
  }
}

</mosaic_0001>

<bundles_post_ra>
// kernel: tpu_custom_call.1
= control target key start
LH: loop header
LB: loop body
LE: loop exit
PB: predicated region body
PF: predicated region fallthrough
CT: control target
= control target key end

     0   :  { %13 = vsyncpa [#allocation3], 0  ;;  %s2611_s0 = inlined_call_operand.vmem [shape: f32[4,512], index: 0, kind: input, shape index: {}]   ;;  %s2612_s1 = inlined_call_operand.vmem [shape: f32[4,512], index: 1, kind: input, shape index: {}]   ;;  %s2613_s2 = inlined_call_operand.vmem [shape: f32[1,512], index: 2, kind: input, shape index: {}]   ;;  %s2614_s3 = inlined_call_operand.vmem [shape: f32[1,512], index: 3, kind: input, shape index: {}]   ;;  %s2615_s4 = inlined_call_operand.hbm [shape: f32[32,512], index: 4, kind: input, shape index: {}]   ;;  %s2616_s5 = inlined_call_operand.vmem [shape: f32[32,4], index: 5, kind: input, shape index: {}]   ;;  %s2617_s6 = inlined_call_operand.vmem [shape: f32[4,32], index: 6, kind: input, shape index: {}]   ;;  %s2618_s7 = inlined_call_operand.vmem [shape: f32[4,1], index: 7, kind: input, shape index: {}]   ;;  %s2619_s8 = inlined_call_operand.hbm [shape: f32[1,1], index: 8, kind: output, shape index: {}]  }
   0x1   :  { %14 = vsyncpa [#allocation4], 0  ;;  %s1672_s27 = smov [#allocation2]   ;;  %s1636_s9 = scalar_lea.hbm %s2615_s4, 2048 }
   0x2   :  { %s28_s28 = sshll.u32 %s1672_s27, 4  ;;  %p1637_p0 = scmp.ne.s32.totalorder %s2615_s4, %s1636_s9  ;;  %s29_s28 = int_to_ptr.vmem [resolvable:$true] %s28_s28 }
   0x3   :  { %p1640_p1 = scmp.lt.u32.totalorder %s1636_s9, %s2615_s4 }
   0x5   :  { %p1642_p2 = pnand %p1640_p1, %p1637_p0 }
   0x7   :  { %1645 = shalt.err (!%p1642_p2)
}
   0x8   :  { %s1646_s14 = scalar_lea.vmem %s29_s28, 2048  ;;  %p1651_p4 = scmp.lt.s32.totalorder %s29_s28, %s29_s28 }
   0x9   :  { %p1647_p3 = scmp.ne.s32.totalorder %s29_s28, %s1646_s14  ;;  %p1652_p5 = scmp.lt.s32.totalorder %s1646_s14, %s1646_s14 }
   0xb   :  { %p1653_p6 = por %p1652_p5, %p1651_p4 }
   0xd   :  { %p1654_p7 = pnand %p1653_p6, %p1647_p3 }
   0xf   :  { %1657 = shalt.err (!%p1654_p7)
}
  0x10   :  { %s1673_s15 = smov 512   ;;  %s1674_s16 = smov 32  }
  0x11   :  { %34 = dma.hbm_to_vmem [thread:$0]  %s2615_s4, 2048, %s29_s28, [#allocation3], %s1673_s15, %s1673_s15, %s1674_s16  }
  0x12   :  { %1668 = dma.done.wait [#allocation3], 2048  }
  0x13   :  { %1669 = vsyncadd [#allocation3], 4294965248  ;;  %v1675_v0 = vmov 2   ;;  %v1676_v1 = vmov 0   ;;  %v116_v2 = vld [vmem:[%s2616_s5] sm:$0xff]  ;;  %v1677_v3 = vmov 3   ;;  %v50_v28 = vlaneseq }
  0x14   :  { %1520 = vset.pattern.permute.xlu1 %v1675_v0  ;;  %1518 = vset.pattern.permute.xlu0 %v1676_v1  ;;  %v1678_v4 = vmov 1   ;;  %v117_v5 = vld [vmem:[%s2616_s5 + $0x8] sm:$0xff]  ;;  %v118_v6 = vld [vmem:[%s2616_s5 + $0x10] sm:$0xff]  ;;  %v509_v7 = vld [vmem:[%s2618_s7] sm:$0xf]  ;;  %v1679_v10 = vmov 6  }
  0x15   :  { %269 = vperm.xlu1 %1520, %v116_v2   ;;  %138 = vperm.xlu0 %1518, %v116_v2   ;;  %v1785_v8 = vld [vmem:[%s2617_s6] sm:$0xf]  ;;  %v119_v9 = vld [vmem:[%s2616_s5 + $0x18] sm:$0xff]  ;;  %v1680_v11 = vmov 8   ;;  %v1681_v12 = vmov 11   ;;  %v1682_v13 = vmov 14  }
  0x16   :  { %v1683_v14 = vmov 4   ;;  %v1684_v15 = vmov 17   ;;  %v1685_v16 = vmov 5   ;;  %v1686_v17 = vmov 20   ;;  %v44_v32 = vld [vmem:[%s2611_s0] sm:$0xff]  ;;  %v45_v33 = vld [vmem:[%s2611_s0 + $0x8] sm:$0xff] }
  0x17   :  { %v1687_v18 = vmov 23   ;;  %v1688_v19 = vmov 26   ;;  %v1689_v20 = vmov 7   ;;  %v1690_v21 = vmov 29   ;;  %v46_v38 = vld [vmem:[%s2612_s1] sm:$0xff]  ;;  %v47_v39 = vld [vmem:[%s2612_s1 + $0x8] sm:$0xff] }
  0x18   :  { %v1691_v22 = vmov 9   ;;  %v1692_v23 = vmov 31   ;;  %v1693_v24 = vmov 10   ;;  %v1694_v25 = vmov 12   ;;  %v48_v40 = vld [vmem:[%s2613_s2] sm:$0xf] }
  0x19   :  { %1521 = vset.pattern.permute.xlu1 %v1677_v3  ;;  %1519 = vset.pattern.permute.xlu0 %v1678_v4  ;;  %v1695_v26 = vmov 13   ;;  %v1696_v27 = vmov 15   ;;  %v1697_v29 = vmov 16   ;;  %v1817_v30 = vshrl.u32 %v50_v28, 7  ;;  %v80_v41 = vld [vmem:[%s2614_s3] sm:$0xf] }
  0x1a   :  { %333 = vperm.xlu1 %1521, %v116_v2   ;;  %205 = vperm.xlu0 %1519, %v116_v2   ;;  %v1698_v31 = vmov 18   ;;  %v72_v42 = vcombine.high %v44_v32, %v44_v32  ;;  %v73_v43 = vcombine.high %v45_v33, %v45_v33  ;;  %v104_v44 = vcombine.high %v46_v38, %v46_v38  ;;  %s1658_s4 = scalar_lea.hbm %s2619_s8, 16 }
  0x1b   :  { %v1827_v34 = vsub.s32 0, %v1817_v30  ;;  %v1830_v35 = vsub.s32 1, %v1817_v30  ;;  %v1833_v36 = vsub.s32 2, %v1817_v30  ;;  %v1836_v37 = vsub.s32 3, %v1817_v30  ;;  %p1659_p8 = scmp.ne.s32.totalorder %s2619_s8, %s1658_s4  ;;  %p1662_p9 = scmp.lt.u32.totalorder %s1658_s4, %s2619_s8 }
  0x1c   :  { %v105_v45 = vcombine.high %v47_v39, %v47_v39  ;;  %v1699_v46 = vmov 19   ;;  %v1700_v59 = vmov 21   ;;  %vm1430_vm0 = vcmask 1043456  }
  0x1d   :  { %2631 = vst [vmem:[#allocation8_spill] sm:$0xff] %v1827_v34  ;;  %2632 = vst [vmem:[#allocation9_spill] sm:$0xff] %v1833_v36  ;;  %v53_v47 = vrot.slane %v48_v40, %v1827_v34  ;;  %v57_v48 = vrot.slane %v48_v40, %v1830_v35  ;;  %v61_v49 = vrot.slane %v48_v40, %v1833_v36  ;;  %p1664_p10 = pnand %p1662_p9, %p1659_p8 }
  0x1e   :  { %1522 = vset.pattern.permute.xlu1 %v1676_v1  ;;  %209 = vperm.xlu0 %1519, %v117_v5   ;;  %2633 = vst [vmem:[#allocation10_spill] sm:$0xff] %v1836_v37  ;;  %v65_v50 = vrot.slane %v48_v40, %v1836_v37  ;;  %v85_v51 = vrot.slane %v80_v41, %v1827_v34 }
  0x1f   :  { %143 = vperm.xlu1 %1522, %v117_v5   ;;  %v89_v52 = vrot.slane %v80_v41, %v1830_v35  ;;  %v93_v53 = vrot.slane %v80_v41, %v1833_v36  ;;  %v97_v54 = vrot.slane %v80_v41, %v1836_v37  ;;  %v76_v55 = vmul.f32 %v53_v47, %v44_v32 }
  0x20   :  { %v77_v56 = vmul.f32 %v72_v42, %v57_v48  ;;  %v78_v57 = vmul.f32 %v61_v49, %v45_v33  ;;  %v79_v58 = vmul.f32 %v73_v43, %v65_v50  ;;  %v108_v60 = vmul.f32 %v85_v51, %v46_v38 }
  0x21   :  { %v109_v61 = vmul.f32 %v104_v44, %v89_v52  ;;  %v110_v62 = vmul.f32 %v93_v53, %v47_v39  ;;  %v111_v63 = vmul.f32 %v105_v45, %v97_v54  ;;  %v1703_v52 = vmov 25  }
  0x22   :  { %1526 = vset.pattern.permute.xlu0 %v1675_v0 }
  0x23   :  { %1523 = vset.pattern.permute.xlu1 %v1675_v0  ;;  %277 = vperm.xlu0 %1526, %v118_v6   ;;  %v114_v2 = vadd.f32 %v110_v62, %v78_v57 }
  0x24   :  { %273 = vperm.xlu1 %1523, %v117_v5  }
  0x25   :  { %v1909_v33 = vrot.slane %v114_v2, %v1836_v37 }
  0x27   :  { %1529 = vset.pattern.permute.xlu0 %v1676_v1  ;;  %2635 = vst [vmem:[#allocation12_spill] sm:$0xff] %v1909_v33 }
  0x28   :  { %1524 = vset.pattern.permute.xlu1 %v1676_v1  ;;  %512 = vperm.xlu0 %1529, %v509_v7   ;;  %v1868_v7 = vrot.slane %v114_v2, %v1827_v34 }
  0x29   :  { %148 = vperm.xlu1 %1524, %v118_v6  }
  0x2c   :  { %1530 = vset.pattern.permute.xlu0 %v1677_v3 }
  0x2d   :  { %1525 = vset.pattern.permute.xlu1 %v1678_v4  ;;  %337 = vperm.xlu0 %1530, %v117_v5  }
  0x2e   :  { %213 = vperm.xlu1 %1525, %v118_v6  }
  0x31   :  { %601 = vperm.xlu0 %1530, %v1785_v8  }
  0x32   :  { %1527 = vset.pattern.permute.xlu1 %v1677_v3 }
  0x33   :  { %341 = vperm.xlu1 %1527, %v118_v6  }
  0x35   :  { %1535 = vset.pattern.permute.xlu0 %v1678_v4 }
  0x36   :  { %217 = vperm.xlu0 %1535, %v119_v9  }
  0x37   :  { %1528 = vset.pattern.permute.xlu1 %v1676_v1 }
  0x38   :  { %517 = vperm.xlu1 %1528, %v1785_v8  }
  0x3a   :  { %1538 = vset.pattern.permute.xlu0 %v1679_v10 }
  0x3b   :  { %685 = vperm.xlu0 %1538, %v1785_v8  }
  0x3c   :  { %1531 = vset.pattern.permute.xlu1 %v1678_v4  ;;  %v1701_v4 = vmov 22  }
  0x3d   :  { %545 = vperm.xlu1 %1531, %v1785_v8  }
  0x3f   :  { %1541 = vset.pattern.permute.xlu0 %v1680_v11 }
  0x40   :  { %741 = vperm.xlu0 %1541, %v1785_v8  }
  0x41   :  { %1532 = vset.pattern.permute.xlu1 %v1675_v0 }
  0x42   :  { %573 = vperm.xlu1 %1532, %v1785_v8  }
  0x44   :  { %1544 = vset.pattern.permute.xlu0 %v1681_v12 }
  0x45   :  { %825 = vperm.xlu0 %1544, %v1785_v8  }
  0x46   :  { %1533 = vset.pattern.permute.xlu1 %v1676_v1  ;;  %v113_v1 = vadd.f32 %v109_v61, %v77_v56 }
  0x47   :  { %153 = vperm.xlu1 %1533, %v119_v9  }
  0x48   :  { %v1865_v6 = vrot.slane %v113_v1, %v1827_v34  ;;  %v1897_v28 = vrot.slane %v113_v1, %v1830_v35  ;;  %v1906_v32 = vrot.slane %v113_v1, %v1836_v37 }
  0x49   :  { %1547 = vset.pattern.permute.xlu0 %v1682_v13  ;;  %v1877_v13 = vrot.slane %v113_v1, %v1833_v36 }
  0x4a   :  { %909 = vperm.xlu0 %1547, %v1785_v8   ;;  %2634 = vst [vmem:[#allocation11_spill] sm:$0xff] %v1906_v32 }
  0x4b   :  { %1534 = vset.pattern.permute.xlu1 %v1683_v14  ;;  %v1880_v14 = vrot.slane %v114_v2, %v1833_v36 }
  0x4c   :  { %629 = vperm.xlu1 %1534, %v1785_v8  }
  0x4e   :  { %1550 = vset.pattern.permute.xlu0 %v1684_v15 }
  0x4f   :  { %993 = vperm.xlu0 %1550, %v1785_v8  }
  0x50   :  { %1536 = vset.pattern.permute.xlu1 %v1685_v16  ;;  %v120_v16 = vld [vmem:[#allocation2] sm:$0xff] }
  0x51   :  { %657 = vperm.xlu1 %1536, %v1785_v8  }
  0x53   :  { %1553 = vset.pattern.permute.xlu0 %v1686_v17 }
  0x54   :  { %1077 = vperm.xlu0 %1553, %v1785_v8  }
  0x55   :  { %1537 = vset.pattern.permute.xlu1 %v1675_v0  ;;  %v112_v0 = vadd.f32 %v108_v60, %v76_v55 }
  0x56   :  { %281 = vperm.xlu1 %1537, %v119_v9  }
  0x57   :  { %v1862_v5 = vrot.slane %v112_v0, %v1827_v34  ;;  %v1874_v11 = vrot.slane %v112_v0, %v1833_v36  ;;  %v1886_v17 = vrot.slane %v112_v0, %v1836_v37 }
  0x58   :  { %1556 = vset.pattern.permute.xlu0 %v1687_v18  ;;  %v121_v18 = vld [vmem:[#allocation2 + $0x8] sm:$0xff] }
  0x59   :  { %1161 = vperm.xlu0 %1556, %v1785_v8  }
  0x5a   :  { %1539 = vset.pattern.permute.xlu1 %v1677_v3  ;;  %v115_v3 = vadd.f32 %v111_v63, %v79_v58 }
  0x5b   :  { %345 = vperm.xlu1 %1539, %v119_v9  }
  0x5c   :  { %v1871_v9 = vrot.slane %v115_v3, %v1827_v34  ;;  %v1883_v15 = vrot.slane %v115_v3, %v1833_v36  ;;  %v1912_v38 = vrot.slane %v115_v3, %v1836_v37 }
  0x5d   :  { %1559 = vset.pattern.permute.xlu0 %v1688_v19  ;;  %v122_v19 = vld [vmem:[#allocation2 + $0x10] sm:$0xff] }
  0x5e   :  { %1245 = vperm.xlu0 %1559, %v1785_v8   ;;  %2636 = vst [vmem:[#allocation13_spill] sm:$0xff] %v1912_v38 }
  0x5f   :  { %1540 = vset.pattern.permute.xlu1 %v1689_v20  ;;  %v123_v20 = vld [vmem:[#allocation2 + $0x18] sm:$0xff] }
  0x60   :  { %713 = vperm.xlu1 %1540, %v1785_v8  }
  0x62   :  { %1562 = vset.pattern.permute.xlu0 %v1690_v21 }
  0x63   :  { %1329 = vperm.xlu0 %1562, %v1785_v8  }
  0x64   :  { %1542 = vset.pattern.permute.xlu1 %v1691_v22 }
  0x65   :  { %769 = vperm.xlu1 %1542, %v1785_v8  }
  0x67   :  { %1565 = vset.pattern.permute.xlu0 %v1692_v23 }
  0x69   :  { %1543 = vset.pattern.permute.xlu1 %v1693_v24 }
  0x6a   :  { %797 = vperm.xlu1 %1543, %v1785_v8  }
  0x6e   :  { %1545 = vset.pattern.permute.xlu1 %v1694_v25 }
  0x6f   :  { %853 = vperm.xlu1 %1545, %v1785_v8  }
  0x73   :  { %1546 = vset.pattern.permute.xlu1 %v1695_v26  ;;  %v1702_v26 = vmov 24  }
  0x74   :  { %881 = vperm.xlu1 %1546, %v1785_v8  }
  0x78   :  { %1548 = vset.pattern.permute.xlu1 %v1696_v27  ;;  %v1894_v27 = vrot.slane %v112_v0, %v1830_v35 }
  0x79   :  { %937 = vperm.xlu1 %1548, %v1785_v8  }
  0x7d   :  { %1549 = vset.pattern.permute.xlu1 %v1697_v29  ;;  %v1900_v29 = vrot.slane %v114_v2, %v1830_v35 }
  0x7e   :  { %965 = vperm.xlu1 %1549, %v1785_v8  }
  0x82   :  { %1551 = vset.pattern.permute.xlu1 %v1698_v31  ;;  %v1903_v31 = vrot.slane %v115_v3, %v1830_v35 }
  0x83   :  { %1021 = vperm.xlu1 %1551, %v1785_v8  }
  0x87   :  { %1552 = vset.pattern.permute.xlu1 %v1699_v46 }
  0x88   :  { %1049 = vperm.xlu1 %1552, %v1785_v8  }
  0x8c   :  { %1554 = vset.pattern.permute.xlu1 %v1700_v59 }
  0x8d   :  { %1105 = vperm.xlu1 %1554, %v1785_v8  }
  0x91   :  { %1555 = vset.pattern.permute.xlu1 %v1701_v4 }
  0x92   :  { %1133 = vperm.xlu1 %1555, %v1785_v8  }
  0x94   :  { %v270_v10 = vpop.permute.xlu1 %269  ;;  %v139_v12 = vpop.permute.xlu0 %138 }
  0x95   :  { %v172_v21 = vmul.f32 %v1862_v5, %v139_v12  ;;  %v173_v22 = vmul.f32 %v1865_v6, %v139_v12  ;;  %v174_v24 = vmul.f32 %v1868_v7, %v139_v12  ;;  %v175_v25 = vmul.f32 %v1871_v9, %v139_v12 }
  0x96   :  { %1557 = vset.pattern.permute.xlu1 %v1702_v26  ;;  %v300_v45 = vmul.f32 %v1874_v11, %v270_v10  ;;  %v301_v46 = vmul.f32 %v1877_v13, %v270_v10  ;;  %v302_v47 = vmul.f32 %v1880_v14, %v270_v10  ;;  %v303_v53 = vmul.f32 %v1883_v15, %v270_v10 }
  0x97   :  { %1189 = vperm.xlu1 %1557, %v1785_v8   ;;  %v188_v39 = vadd.f32 %v172_v21, %v120_v16  ;;  %v189_v40 = vadd.f32 %v173_v22, %v121_v18  ;;  %v190_v41 = vadd.f32 %v174_v24, %v122_v19  ;;  %v191_v42 = vadd.f32 %v175_v25, %v123_v20  ;;  %v124_v16 = vld [vmem:[#allocation2 + $0x20] sm:$0xff]  ;;  %v125_v18 = vld [vmem:[#allocation2 + $0x28] sm:$0xff]  ;;  %v126_v19 = vld [vmem:[#allocation2 + $0x30] sm:$0xff] }
  0x98   :  { %v127_v20 = vld [vmem:[#allocation2 + $0x38] sm:$0xff]  ;;  %v1704_v26 = vmov 27  }
  0x99   :  { %v334_v43 = vpop.permute.xlu1 %333  ;;  %v206_v44 = vpop.permute.xlu0 %205 }
  0x9a   :  { %v236_v48 = vmul.f32 %v1894_v27, %v206_v44  ;;  %v237_v49 = vmul.f32 %v1897_v28, %v206_v44  ;;  %v238_v50 = vmul.f32 %v1900_v29, %v206_v44  ;;  %v239_v51 = vmul.f32 %v1903_v31, %v206_v44 }
  0x9b   :  { %1558 = vset.pattern.permute.xlu1 %v1703_v52  ;;  %v364_v54 = vmul.f32 %v1886_v17, %v334_v43  ;;  %v365_v55 = vmul.f32 %v1906_v32, %v334_v43  ;;  %v366_v56 = vmul.f32 %v1909_v33, %v334_v43  ;;  %v367_v62 = vmul.f32 %v1912_v38, %v334_v43 }
  0x9c   :  { %1217 = vperm.xlu1 %1558, %v1785_v8   ;;  %v252_v57 = vadd.f32 %v236_v48, %v188_v39  ;;  %v253_v58 = vadd.f32 %v237_v49, %v189_v40  ;;  %v254_v59 = vadd.f32 %v238_v50, %v190_v41  ;;  %v255_v60 = vadd.f32 %v239_v51, %v191_v42 }
  0x9d   :  { %v210_v61 = vpop.permute.xlu0 %209 }
  0x9e   :  { %v144_v63 = vpop.permute.xlu1 %143  ;;  %v240_v0 = vmul.f32 %v1894_v27, %v210_v61  ;;  %v241_v1 = vmul.f32 %v1897_v28, %v210_v61  ;;  %v242_v2 = vmul.f32 %v1900_v29, %v210_v61  ;;  %v316_v3 = vadd.f32 %v300_v45, %v252_v57 }
  0x9f   :  { %v317_v4 = vadd.f32 %v301_v46, %v253_v58  ;;  %v318_v10 = vadd.f32 %v302_v47, %v254_v59  ;;  %v319_v12 = vadd.f32 %v303_v53, %v255_v60  ;;  %v176_v21 = vmul.f32 %v1862_v5, %v144_v63 }
  0xa0   :  { %v177_v22 = vmul.f32 %v1865_v6, %v144_v63  ;;  %v178_v24 = vmul.f32 %v1868_v7, %v144_v63  ;;  %v179_v25 = vmul.f32 %v1871_v9, %v144_v63  ;;  %1560 = vset.pattern.permute.xlu1 %v1704_v26  ;;  %v1934_v39 = vadd.f32 %v364_v54, %v316_v3  ;;  %v129_v3 = vld [vmem:[#allocation2 + $0x48] sm:$0xff] }
  0xa1   :  { %v1936_v40 = vadd.f32 %v365_v55, %v317_v4  ;;  %v1938_v41 = vadd.f32 %v366_v56, %v318_v10  ;;  %v1940_v42 = vadd.f32 %v367_v62, %v319_v12  ;;  %1273 = vperm.xlu1 %1560, %v1785_v8   ;;  %v192_v43 = vadd.f32 %v176_v21, %v124_v16  ;;  %v130_v4 = vld [vmem:[#allocation2 + $0x50] sm:$0xff] }
  0xa2   :  { %v193_v44 = vadd.f32 %v177_v22, %v125_v18  ;;  %v194_v45 = vadd.f32 %v178_v24, %v126_v19  ;;  %v243_v46 = vmul.f32 %v1903_v31, %v210_v61  ;;  %v278_v47 = vpop.permute.xlu0 %277  ;;  %v1464_v48 = vmul.f32 -1.442695, %v1934_v39 }
  0xa3   :  { %v1465_v49 = vmul.f32 -1.442695, %v1936_v40  ;;  %v1466_v50 = vmul.f32 -1.442695, %v1938_v41  ;;  %v195_v51 = vadd.f32 %v179_v25, %v127_v20  ;;  %v274_v52 = vpop.permute.xlu1 %273  ;;  %v1467_v53 = vmul.f32 -1.442695, %v1940_v42 }
  0xa4   :  { %1570 = vpow2.f32 %v1464_v48  ;;  %v256_v54 = vadd.f32 %v240_v0, %v192_v43  ;;  %v257_v55 = vadd.f32 %v241_v1, %v193_v44  ;;  %v1705_v56 = vmov 28   ;;  %v128_v0 = vld [vmem:[#allocation2 + $0x40] sm:$0xff] }
  0xa5   :  { %1561 = vset.pattern.permute.xlu1 %v1705_v56  ;;  %1572 = vpow2.f32 %v1465_v49  ;;  %v258_v57 = vadd.f32 %v242_v2, %v194_v45  ;;  %v304_v58 = vmul.f32 %v1874_v11, %v274_v52  ;;  %v305_v59 = vmul.f32 %v1877_v13, %v274_v52  ;;  %v131_v2 = vld [vmem:[#allocation2 + $0x58] sm:$0xff] }
  0xa6   :  { %1301 = vperm.xlu1 %1561, %v1785_v8   ;;  %1574 = vpow2.f32 %v1466_v50  ;;  %v259_v60 = vadd.f32 %v243_v46, %v195_v51  ;;  %v306_v61 = vmul.f32 %v1880_v14, %v274_v52  ;;  %v307_v62 = vmul.f32 %v1883_v15, %v274_v52 }
  0xa7   :  { %v1953_v63 = vpop.permute.xlu0 %512  ;;  %1576 = vpow2.f32 %v1467_v53  ;;  %v320_v19 = vadd.f32 %v304_v58, %v256_v54  ;;  %v321_v20 = vadd.f32 %v305_v59, %v257_v55  ;;  %v308_v21 = vmul.f32 %v1874_v11, %v278_v47 }
  0xa8   :  { %v149_v1 = vpop.permute.xlu1 %148  ;;  %v309_v22 = vmul.f32 %v1877_v13, %v278_v47  ;;  %v1706_v24 = vmov 30   ;;  %v322_v25 = vadd.f32 %v306_v61, %v258_v57  ;;  %v323_v26 = vadd.f32 %v307_v62, %v259_v60 }
  0xa9   :  { %v180_v10 = vmul.f32 %v1862_v5, %v149_v1  ;;  %v181_v12 = vmul.f32 %v1865_v6, %v149_v1  ;;  %v182_v16 = vmul.f32 %v1868_v7, %v149_v1  ;;  %v183_v18 = vmul.f32 %v1871_v9, %v149_v1 }
  0xaa   :  { %1563 = vset.pattern.permute.xlu1 %v1706_v24  ;;  %v310_v43 = vmul.f32 %v1880_v14, %v278_v47  ;;  %v311_v44 = vmul.f32 %v1883_v15, %v278_v47 }
  0xab   :  { %1357 = vperm.xlu1 %1563, %v1785_v8   ;;  %v196_v45 = vadd.f32 %v180_v10, %v128_v0  ;;  %v197_v46 = vadd.f32 %v181_v12, %v129_v3  ;;  %v198_v48 = vadd.f32 %v182_v16, %v130_v4  ;;  %v199_v49 = vadd.f32 %v183_v18, %v131_v2 }
  0xac   :  { %v338_v50 = vpop.permute.xlu0 %337 }
  0xad   :  { %v368_v51 = vmul.f32 %v1886_v17, %v338_v50  ;;  %v369_v52 = vmul.f32 %v1906_v32, %v338_v50  ;;  %v370_v53 = vmul.f32 %v1909_v33, %v338_v50  ;;  %v371_v54 = vmul.f32 %v1912_v38, %v338_v50  ;;  %v214_v55 = vpop.permute.xlu1 %213 }
  0xae   :  { %v244_v56 = vmul.f32 %v1894_v27, %v214_v55  ;;  %v245_v47 = vmul.f32 %v1897_v28, %v214_v55  ;;  %v246_v57 = vmul.f32 %v1900_v29, %v214_v55  ;;  %v247_v58 = vmul.f32 %v1903_v31, %v214_v55  ;;  %v1571_v59 = vpop.eup %1570 }
  0xaf   :  { %v1972_v60 = vadd.f32 %v368_v51, %v320_v19  ;;  %v1974_v61 = vadd.f32 %v369_v52, %v321_v20  ;;  %v1976_v62 = vadd.f32 %v370_v53, %v322_v25  ;;  %v1978_v0 = vadd.f32 %v371_v54, %v323_v26  ;;  %1564 = vset.pattern.permute.xlu1 %v1692_v23  ;;  %v1573_v1 = vpop.eup %1572 }
  0xb0   :  { %v444_v3 = vadd.f32 1.0, %v1571_v59  ;;  %v260_v4 = vadd.f32 %v244_v56, %v196_v45  ;;  %v261_v2 = vadd.f32 %v245_v47, %v197_v46  ;;  %v262_v10 = vadd.f32 %v246_v57, %v198_v48  ;;  %1385 = vperm.xlu1 %1564, %v1785_v8   ;;  %v1575_v12 = vpop.eup %1574  ;;  %v1992_v56 = vpop.permute.xlu0 %601 }
  0xb1   :  { %v445_v16 = vadd.f32 1.0, %v1573_v1  ;;  %v1468_v18 = vmul.f32 -1.442695, %v1972_v60  ;;  %v1469_v19 = vmul.f32 -1.442695, %v1974_v61  ;;  %v263_v20 = vadd.f32 %v247_v58, %v199_v49  ;;  %v1577_v24 = vpop.eup %1576 }
  0xb2   :  { %v446_v25 = vadd.f32 1.0, %v1575_v12  ;;  %1578 = vrcp.f32 %v444_v3  ;;  %v1470_v26 = vmul.f32 -1.442695, %v1976_v62  ;;  %v1471_v23 = vmul.f32 -1.442695, %v1978_v0  ;;  %v342_v50 = vpop.permute.xlu1 %341 }
  0xb3   :  { %v447_v45 = vadd.f32 1.0, %v1577_v24  ;;  %1580 = vrcp.f32 %v445_v16  ;;  %v324_v46 = vadd.f32 %v308_v21, %v260_v4  ;;  %v325_v48 = vadd.f32 %v309_v22, %v261_v2 }
  0xb4   :  { %1582 = vrcp.f32 %v446_v25  ;;  %v326_v8 = vadd.f32 %v310_v43, %v262_v10  ;;  %v327_v51 = vadd.f32 %v311_v44, %v263_v20  ;;  %v372_v52 = vmul.f32 %v1886_v17, %v342_v50 }
  0xb5   :  { %1584 = vrcp.f32 %v447_v45  ;;  %v373_v49 = vmul.f32 %v1906_v32, %v342_v50  ;;  %v374_v53 = vmul.f32 %v1909_v33, %v342_v50  ;;  %v375_v54 = vmul.f32 %v1912_v38, %v342_v50  ;;  %v218_v3 = vpop.permute.xlu0 %217 }
  0xb6   :  { %1586 = vpow2.f32 %v1468_v18  ;;  %v1990_v55 = vadd.f32 %v372_v52, %v324_v46  ;;  %v2007_v2 = vsub.s32 6, %v1817_v30  ;;  %v2010_v10 = vsub.s32 4, %v1817_v30 }
  0xb7   :  { %1588 = vpow2.f32 %v1469_v19  ;;  %v1994_v21 = vadd.f32 %v373_v49, %v325_v48  ;;  %v1996_v22 = vadd.f32 %v374_v53, %v326_v8  ;;  %v1998_v43 = vadd.f32 %v375_v54, %v327_v51  ;;  %v518_v44 = vpop.permute.xlu1 %517 }
  0xb8   :  { %1590 = vpow2.f32 %v1470_v26  ;;  %v1472_v47 = vmul.f32 -1.442695, %v1990_v55  ;;  %2637 = vst [vmem:[#allocation14_spill] sm:$0xff] %v2007_v2  ;;  %v2016_v18 = vsub.s32 5, %v1817_v30  ;;  %v2019_v19 = vsub.s32 7, %v1817_v30 }
  0xb9   :  { %1592 = vpow2.f32 %v1471_v23  ;;  %v1473_v57 = vmul.f32 -1.442695, %v1994_v21  ;;  %v1474_v58 = vmul.f32 -1.442695, %v1996_v22  ;;  %v1475_v59 = vmul.f32 -1.442695, %v1998_v43 }
  0xba   :  { %1594 = vpow2.f32 %v1472_v47  ;;  %v2025_v25 = vmul.f32 %v1894_v27, %v218_v3  ;;  %v2028_v26 = vmul.f32 %v1897_v28, %v218_v3  ;;  %v2041_v45 = vmul.f32 %v1903_v31, %v218_v3 }
  0xbb   :  { %1596 = vpow2.f32 %v1473_v57 }
  0xbc   :  { %v1579_v1 = vpop.eup %1578  ;;  %1598 = vpow2.f32 %v1474_v58  ;;  %v2004_v4 = vpop.permute.xlu1 %545 }
  0xbd   :  { %v1581_v12 = vpop.eup %1580  ;;  %v2013_v16 = vmul.f32 %v1579_v1, %v1934_v39  ;;  %1600 = vpow2.f32 %v1475_v59  ;;  %v2031_v39 = vmul.f32 %v1900_v29, %v218_v3  ;;  %v686_v58 = vpop.permute.xlu0 %685 }
  0xbe   :  { %v1583_v20 = vpop.eup %1582  ;;  %v2022_v24 = vmul.f32 %v1581_v12, %v1936_v40 }
  0xbf   :  { %v1585_v23 = vpop.eup %1584  ;;  %v2034_v50 = vmul.f32 %v1583_v20, %v1938_v41  ;;  %v523_v30 = vrot.slane %v2013_v16, %v1827_v34  ;;  %v607_v40 = vrot.slane %v2013_v16, %v1836_v37  ;;  %v551_v46 = vrot.slane %v2013_v16, %v1830_v35 }
  0xc0   :  { %v1587_v27 = vpop.eup %1586  ;;  %v2044_v28 = vmul.f32 %v1585_v23, %v1940_v42  ;;  %v527_v29 = vrot.slane %v2022_v24, %v1827_v34  ;;  %v611_v41 = vrot.slane %v2022_v24, %v1836_v37  ;;  %v555_v52 = vrot.slane %v2022_v24, %v1830_v35 }
  0xc1   :  { %v1589_v48 = vpop.eup %1588  ;;  %v448_v8 = vadd.f32 1.0, %v1587_v27  ;;  %v531_v51 = vrot.slane %v2034_v50, %v1827_v34  ;;  %v536_v31 = vmul.f32 %v523_v30, %v518_v44  ;;  %v2056_v42 = vpop.permute.xlu1 %573  ;;  %v615_v57 = vrot.slane %v2034_v50, %v1836_v37 }
  0xc2   :  { %v1591_v49 = vpop.eup %1590  ;;  %v449_v53 = vadd.f32 1.0, %v1589_v48  ;;  %v535_v54 = vrot.slane %v2044_v28, %v1827_v34  ;;  %v537_v47 = vmul.f32 %v527_v29, %v518_v44  ;;  %v619_v12 = vrot.slane %v2044_v28, %v1836_v37 }
  0xc3   :  { %v1593_v59 = vpop.eup %1592  ;;  %v450_v1 = vadd.f32 1.0, %v1591_v49  ;;  %1602 = vrcp.f32 %v448_v8  ;;  %v538_v3 = vmul.f32 %v531_v51, %v518_v44  ;;  %v540_v27 = vadd.f32 %v536_v31, %v1953_v63 }
  0xc4   :  { %v1595_v20 = vpop.eup %1594  ;;  %v451_v23 = vadd.f32 1.0, %v1593_v59  ;;  %1604 = vrcp.f32 %v449_v53  ;;  %v539_v30 = vmul.f32 %v535_v54, %v518_v44  ;;  %v541_v38 = vadd.f32 %v537_v47, %v1953_v63 }
  0xc5   :  { %v1597_v48 = vpop.eup %1596  ;;  %1606 = vrcp.f32 %v450_v1  ;;  %v452_v29 = vadd.f32 1.0, %v1595_v20  ;;  %v542_v33 = vadd.f32 %v538_v3, %v1953_v63  ;;  %v2069_v49 = vmul.f32 %v607_v40, %v1992_v56  ;;  %v2083_v40 = vpop.permute.xlu0 %741 }
  0xc6   :  { %v1599_v32 = vpop.eup %1598  ;;  %1608 = vrcp.f32 %v451_v23  ;;  %v453_v8 = vadd.f32 1.0, %v1597_v48  ;;  %v543_v51 = vadd.f32 %v539_v30, %v1953_v63  ;;  %v2071_v59 = vpop.permute.xlu1 %153  ;;  %v2074_v31 = vmul.f32 %v611_v41, %v1992_v56 }
  0xc7   :  { %v1601_v44 = vpop.eup %1600  ;;  %v454_v53 = vadd.f32 1.0, %v1599_v32  ;;  %1610 = vrcp.f32 %v452_v29  ;;  %v2077_v54 = vmul.f32 %v615_v57, %v1992_v56  ;;  %v559_v1 = vrot.slane %v2034_v50, %v1830_v35 }
  0xc8   :  { %v455_v47 = vadd.f32 1.0, %v1601_v44  ;;  %1612 = vrcp.f32 %v453_v8  ;;  %v563_v63 = vrot.slane %v2044_v28, %v1830_v35  ;;  %v564_v32 = vmul.f32 %v551_v46, %v2004_v4 }
  0xc9   :  { %1614 = vrcp.f32 %v454_v53  ;;  %v565_v3 = vmul.f32 %v555_v52, %v2004_v4  ;;  %v691_v41 = vrot.slane %v2013_v16, %v2007_v2  ;;  %v566_v57 = vmul.f32 %v559_v1, %v2004_v4 }
  0xca   :  { %1616 = vrcp.f32 %v455_v47  ;;  %v567_v20 = vmul.f32 %v563_v63, %v2004_v4  ;;  %v695_v23 = vrot.slane %v2022_v24, %v2007_v2  ;;  %v2094_v30 = vmul.f32 %v619_v12, %v1992_v56 }
  0xcb   :  { %v568_v48 = vadd.f32 %v564_v32, %v540_v27  ;;  %v699_v46 = vrot.slane %v2034_v50, %v2007_v2  ;;  %v703_v52 = vrot.slane %v2044_v28, %v2007_v2  ;;  %v2100_v29 = vpop.permute.xlu1 %629  ;;  %v569_v8 = vadd.f32 %v565_v3, %v541_v38  ;;  %v2121_v3 = vpop.permute.xlu0 %825 }
  0xcc   :  { %v570_v44 = vadd.f32 %v566_v57, %v542_v33  ;;  %v571_v53 = vadd.f32 %v567_v20, %v543_v51  ;;  %v2102_v47 = vmul.f32 %v691_v41, %v686_v58  ;;  %v2104_v1 = vmul.f32 %v695_v23, %v686_v58 }
  0xcd   :  { %v1603_v4 = vpop.eup %1602  ;;  %v2106_v63 = vmul.f32 %v699_v46, %v686_v58  ;;  %v579_v56 = vrot.slane %v2013_v16, %v1833_v36  ;;  %v583_v12 = vrot.slane %v2022_v24, %v1833_v36  ;;  %v2115_v38 = vmul.f32 %v703_v52, %v686_v58 }
  0xce   :  { %2638 = vst [vmem:[#allocation15_spill] sm:$0xff] %v2102_v47  ;;  %2639 = vst [vmem:[#allocation16_spill] sm:$0xff] %v2104_v1  ;;  %v1605_v27 = vpop.eup %1604  ;;  %v2113_v32 = vmul.f32 %v1603_v4, %v1972_v60  ;;  %v587_v33 = vrot.slane %v2034_v50, %v1833_v36  ;;  %v591_v51 = vrot.slane %v2044_v28, %v1833_v36  ;;  %v132_v1 = vld [vmem:[#allocation2 + $0x60] sm:$0xff] }
  0xcf   :  { %2640 = vst [vmem:[#allocation17_spill] sm:$0xff] %v2106_v63  ;;  %2641 = vst [vmem:[#allocation18_spill] sm:$0xff] %v2115_v38  ;;  %v1607_v41 = vpop.eup %1606  ;;  %v2124_v57 = vmul.f32 %v1605_v27, %v1974_v61  ;;  %v592_v20 = vmul.f32 %v579_v56, %v2056_v42  ;;  %v593_v23 = vmul.f32 %v583_v12, %v2056_v42 }
  0xd0   :  { %v184_v60 = vmul.f32 %v1862_v5, %v2071_v59  ;;  %v1609_v58 = vpop.eup %1608  ;;  %v2131_v46 = vmul.f32 %v1607_v41, %v1976_v62  ;;  %v594_v52 = vmul.f32 %v587_v33, %v2056_v42  ;;  %v747_v4 = vrot.slane %v2113_v32, %v1827_v34  ;;  %v2138_v27 = vpop.permute.xlu1 %657 }
  0xd1   :  { %v185_v61 = vmul.f32 %v1865_v6, %v2071_v59  ;;  %v1611_v56 = vpop.eup %1610  ;;  %v2141_v12 = vmul.f32 %v1609_v58, %v1978_v0  ;;  %v595_v5 = vmul.f32 %v591_v51, %v2056_v42  ;;  %v596_v36 = vadd.f32 %v592_v20, %v568_v48  ;;  %v133_v51 = vld [vmem:[#allocation2 + $0x68] sm:$0xff] }
  0xd2   :  { %v751_v62 = vrot.slane %v2124_v57, %v1827_v34  ;;  %v1613_v41 = vpop.eup %1612  ;;  %v2147_v33 = vmul.f32 %v1611_v56, %v1990_v55  ;;  %v597_v38 = vadd.f32 %v593_v23, %v569_v8  ;;  %v598_v63 = vadd.f32 %v594_v52, %v570_v44  ;;  %v134_v55 = vld [vmem:[#allocation2 + $0x70] sm:$0xff]  ;;  %v135_v23 = vld [vmem:[#allocation2 + $0x78] sm:$0xff]  ;;  %v910_v52 = vpop.permute.xlu0 %909 }
  0xd3   :  { %v755_v6 = vrot.slane %v2131_v46, %v1827_v34  ;;  %v1615_v47 = vpop.eup %1614  ;;  %v2152_v0 = vmul.f32 %v1613_v41, %v1994_v21  ;;  %v599_v58 = vadd.f32 %v595_v5, %v571_v53  ;;  %v759_v42 = vrot.slane %v2141_v12, %v1827_v34 }
  0xd4   :  { %v2157_v48 = vmul.f32 %v747_v4, %v2083_v40  ;;  %v1617_v20 = vpop.eup %1616  ;;  %v2160_v8 = vmul.f32 %v1615_v47, %v1996_v22  ;;  %v2163_v44 = vmul.f32 %v751_v62, %v2083_v40  ;;  %v186_v21 = vmul.f32 %v1868_v7, %v2071_v59 }
  0xd5   :  { %v187_v53 = vmul.f32 %v1871_v9, %v2071_v59  ;;  %v2170_v4 = vmul.f32 %v1617_v20, %v1998_v43  ;;  %v2173_v56 = vmul.f32 %v755_v6, %v2083_v40  ;;  %v2176_v22 = vmul.f32 %v759_v42, %v2083_v40  ;;  %v2180_v5 = vpop.permute.xlu1 %281 }
  0xd6   :  { %v2178_v47 = vadd.f32 %v184_v60, %v132_v1  ;;  %v2182_v62 = vadd.f32 %v185_v61, %v133_v51  ;;  %v2184_v7 = vadd.f32 %v186_v21, %v134_v55  ;;  %v831_v9 = vrot.slane %v2113_v32, %v1836_v37 }
  0xd7   :  { %v835_v43 = vrot.slane %v2124_v57, %v1836_v37  ;;  %v2190_v59 = vadd.f32 %v187_v53, %v135_v23  ;;  %v839_v40 = vrot.slane %v2131_v46, %v1836_v37  ;;  %v843_v1 = vrot.slane %v2141_v12, %v1836_v37 }
  0xd8   :  { %v624_v60 = vadd.f32 %v2069_v49, %v596_v36  ;;  %v2198_v61 = vmul.f32 %v831_v9, %v2121_v3  ;;  %v625_v6 = vadd.f32 %v2074_v31, %v597_v38  ;;  %v626_v42 = vadd.f32 %v2077_v54, %v598_v63  ;;  %v994_v63 = vpop.permute.xlu0 %993 }
  0xd9   :  { %v2201_v41 = vmul.f32 %v835_v43, %v2121_v3  ;;  %v2206_v51 = vmul.f32 %v839_v40, %v2121_v3  ;;  %v627_v55 = vadd.f32 %v2094_v30, %v599_v58  ;;  %v635_v20 = vrot.slane %v2013_v16, %v2010_v10 }
  0xda   :  { %2642 = vst [vmem:[#allocation19_spill] sm:$0xff] %v2198_v61  ;;  %v639_v36 = vrot.slane %v2022_v24, %v2010_v10  ;;  %v643_v49 = vrot.slane %v2034_v50, %v2010_v10  ;;  %v647_v23 = vrot.slane %v2044_v28, %v2010_v10  ;;  %v915_v31 = vrot.slane %v2113_v32, %v2007_v2  ;;  %v2221_v30 = vpop.permute.xlu1 %345 }
  0xdb   :  { %2643 = vst [vmem:[#allocation20_spill] sm:$0xff] %v2201_v41  ;;  %2644 = vst [vmem:[#allocation21_spill] sm:$0xff] %v2206_v51  ;;  %v919_v54 = vrot.slane %v2124_v57, %v2007_v2  ;;  %v648_v38 = vmul.f32 %v635_v20, %v2100_v29  ;;  %v923_v21 = vrot.slane %v2131_v46, %v2007_v2 }
  0xdc   :  { %v649_v58 = vmul.f32 %v639_v36, %v2100_v29  ;;  %v927_v53 = vrot.slane %v2141_v12, %v2007_v2  ;;  %v2230_v9 = vmul.f32 %v843_v1, %v2121_v3  ;;  %v650_v43 = vmul.f32 %v643_v49, %v2100_v29 }
  0xdd   :  { %v651_v40 = vmul.f32 %v647_v23, %v2100_v29  ;;  %v2234_v37 = vmul.f32 %v915_v31, %v910_v52  ;;  %v652_v34 = vadd.f32 %v648_v38, %v624_v60  ;;  %v2236_v20 = vmul.f32 %v919_v54, %v910_v52  ;;  %v1078_v54 = vpop.permute.xlu0 %1077 }
  0xde   :  { %v653_v51 = vadd.f32 %v649_v58, %v625_v6  ;;  %v2238_v36 = vmul.f32 %v923_v21, %v910_v52  ;;  %v654_v41 = vadd.f32 %v650_v43, %v626_v42  ;;  %v2240_v61 = vmul.f32 %v927_v53, %v910_v52 }
  0xdf   :  { %2645 = vst [vmem:[#allocation22_spill] sm:$0xff] %v2234_v37  ;;  %2646 = vst [vmem:[#allocation23_spill] sm:$0xff] %v2236_v20  ;;  %v663_v2 = vrot.slane %v2013_v16, %v2016_v18  ;;  %v667_v3 = vrot.slane %v2022_v24, %v2016_v18  ;;  %v671_v29 = vrot.slane %v2034_v50, %v2016_v18  ;;  %v2254_v52 = vpop.permute.xlu1 %713 }
  0xe0   :  { %2647 = vst [vmem:[#allocation24_spill] sm:$0xff] %v2238_v36  ;;  %2648 = vst [vmem:[#allocation25_spill] sm:$0xff] %v2240_v61  ;;  %v675_v1 = vrot.slane %v2044_v28, %v2016_v18  ;;  %v999_v60 = vrot.slane %v2147_v33, %v1830_v35  ;;  %v1003_v6 = vrot.slane %v2152_v0, %v1830_v35 }
  0xe1   :  { %v676_v42 = vmul.f32 %v663_v2, %v2138_v27  ;;  %v677_v49 = vmul.f32 %v667_v3, %v2138_v27  ;;  %v1007_v23 = vrot.slane %v2160_v8, %v1830_v35  ;;  %v1011_v31 = vrot.slane %v2170_v4, %v1830_v35 }
  0xe2   :  { %v655_v38 = vadd.f32 %v651_v40, %v627_v55  ;;  %v678_v58 = vmul.f32 %v671_v29, %v2138_v27  ;;  %v679_v21 = vmul.f32 %v675_v1, %v2138_v27  ;;  %v2264_v53 = vmul.f32 %v999_v60, %v994_v63 }
  0xe3   :  { %v680_v43 = vadd.f32 %v676_v42, %v652_v34  ;;  %v681_v61 = vadd.f32 %v677_v49, %v653_v51  ;;  %v2266_v36 = vmul.f32 %v1003_v6, %v994_v63  ;;  %v2268_v2 = vmul.f32 %v1007_v23, %v994_v63 }
  0xe4   :  { %v682_v3 = vadd.f32 %v678_v58, %v654_v41  ;;  %v2270_v20 = vmul.f32 %v1011_v31, %v994_v63  ;;  %v1083_v37 = vrot.slane %v2147_v33, %v2010_v10  ;;  %v1087_v55 = vrot.slane %v2152_v0, %v2010_v10  ;;  %v2282_v29 = vpop.permute.xlu1 %769  ;;  %v2649_v58 = vld [vmem:[#allocation11_spill] sm:$0xff] }
  0xe5   :  { %v683_v40 = vadd.f32 %v679_v21, %v655_v38  ;;  %v1091_v27 = vrot.slane %v2160_v8, %v2010_v10  ;;  %v1095_v34 = vrot.slane %v2170_v4, %v2010_v10  ;;  %v264_v51 = vadd.f32 %v2025_v25, %v2178_v47  ;;  %v2300_v47 = vpop.permute.xlu0 %1161 }
  0xe6   :  { %v2284_v41 = vmul.f32 %v1083_v37, %v1078_v54  ;;  %v2286_v63 = vmul.f32 %v1087_v55, %v1078_v54  ;;  %v265_v1 = vadd.f32 %v2028_v26, %v2182_v62  ;;  %v266_v60 = vadd.f32 %v2031_v39, %v2184_v7  ;;  %v2650_v55 = vld [vmem:[#allocation12_spill] sm:$0xff] }
  0xe7   :  { %v2292_v6 = vmul.f32 %v1091_v27, %v1078_v54  ;;  %v267_v42 = vadd.f32 %v2041_v45, %v2190_v59  ;;  %v312_v25 = vmul.f32 %v1874_v11, %v2180_v5  ;;  %v313_v37 = vmul.f32 %v1877_v13, %v2180_v5 }
  0xe8   :  { %v2302_v49 = vmul.f32 %v1095_v34, %v1078_v54  ;;  %v314_v26 = vmul.f32 %v1880_v14, %v2180_v5  ;;  %v315_v39 = vmul.f32 %v1883_v15, %v2180_v5  ;;  %v1167_v62 = vrot.slane %v2147_v33, %v2019_v19  ;;  %v2651_v34 = vld [vmem:[#allocation13_spill] sm:$0xff] }
  0xe9   :  { %v328_v45 = vadd.f32 %v312_v25, %v264_v51  ;;  %v329_v7 = vadd.f32 %v313_v37, %v265_v1  ;;  %v1171_v11 = vrot.slane %v2152_v0, %v2019_v19  ;;  %v1175_v13 = vrot.slane %v2160_v8, %v2019_v19  ;;  %v798_v15 = vpop.permute.xlu1 %797  ;;  %v2652_v1 = vld [vmem:[#allocation15_spill] sm:$0xff] }
  0xea   :  { %v330_v59 = vadd.f32 %v314_v26, %v266_v60  ;;  %v331_v23 = vadd.f32 %v315_v39, %v267_v42  ;;  %v1179_v31 = vrot.slane %v2170_v4, %v2019_v19  ;;  %v2317_v14 = vmul.f32 %v1167_v62, %v2300_v47  ;;  %v2653_v42 = vld [vmem:[#allocation16_spill] sm:$0xff]  ;;  %v2654_v39 = vld [vmem:[#allocation17_spill] sm:$0xff] }
  0xeb   :  { %v2320_v5 = vmul.f32 %v1171_v11, %v2300_v47  ;;  %v2323_v54 = vmul.f32 %v1175_v13, %v2300_v47  ;;  %v376_v38 = vmul.f32 %v1886_v17, %v2221_v30  ;;  %v377_v21 = vmul.f32 %v2649_v58, %v2221_v30  ;;  %v2655_v17 = vld [vmem:[#allocation18_spill] sm:$0xff] }
  0xec   :  { %v378_v27 = vmul.f32 %v2650_v55, %v2221_v30  ;;  %v379_v51 = vmul.f32 %v2651_v34, %v2221_v30  ;;  %v708_v60 = vadd.f32 %v2652_v1, %v680_v43  ;;  %v709_v25 = vadd.f32 %v2653_v42, %v681_v61 }
  0xed   :  { %v2335_v37 = vadd.f32 %v376_v38, %v328_v45  ;;  %v2337_v26 = vadd.f32 %v377_v21, %v329_v7  ;;  %v710_v62 = vadd.f32 %v2654_v39, %v682_v3  ;;  %v711_v11 = vadd.f32 %v2655_v17, %v683_v40 }
  0xee   :  { %v2341_v13 = vadd.f32 %v378_v27, %v330_v59  ;;  %v2343_v58 = vadd.f32 %v379_v51, %v331_v23  ;;  %v719_v55 = vrot.slane %v2013_v16, %v2019_v19  ;;  %v723_v30 = vrot.slane %v2022_v24, %v2019_v19  ;;  %v854_v40 = vpop.permute.xlu1 %853 }
  0xef   :  { %v1476_v61 = vmul.f32 -1.442695, %v2335_v37  ;;  %v1477_v43 = vmul.f32 -1.442695, %v2337_v26  ;;  %v727_v45 = vrot.slane %v2034_v50, %v2019_v19  ;;  %v731_v3 = vrot.slane %v2044_v28, %v2019_v19 }
  0xf0   :  { %v1478_v7 = vmul.f32 -1.442695, %v2341_v13  ;;  %v1479_v59 = vmul.f32 -1.442695, %v2343_v58  ;;  %v732_v16 = vmul.f32 %v719_v55, %v2254_v52  ;;  %v733_v23 = vmul.f32 %v723_v30, %v2254_v52 }
  0xf1   :  { %1618 = vpow2.f32 %v1476_v61  ;;  %v734_v24 = vmul.f32 %v727_v45, %v2254_v52  ;;  %v735_v38 = vmul.f32 %v731_v3, %v2254_v52  ;;  %v775_v50 = vrot.slane %v2113_v32, %v1830_v35 }
  0xf2   :  { %1620 = vpow2.f32 %v1477_v43  ;;  %v736_v21 = vadd.f32 %v732_v16, %v708_v60  ;;  %v737_v28 = vadd.f32 %v733_v23, %v709_v25  ;;  %v779_v27 = vrot.slane %v2124_v57, %v1830_v35 }
  0xf3   :  { %1622 = vpow2.f32 %v1478_v7  ;;  %v738_v34 = vadd.f32 %v734_v24, %v710_v62  ;;  %v739_v51 = vadd.f32 %v735_v38, %v711_v11  ;;  %v783_v1 = vrot.slane %v2131_v46, %v1830_v35  ;;  %v2371_v17 = vpop.permute.xlu1 %881 }
  0xf4   :  { %1624 = vpow2.f32 %v1479_v59  ;;  %v764_v42 = vadd.f32 %v2157_v48, %v736_v21  ;;  %v765_v52 = vadd.f32 %v2163_v44, %v737_v28  ;;  %v787_v39 = vrot.slane %v2141_v12, %v1830_v35  ;;  %v2656_v48 = vld [vmem:[#allocation9_spill] sm:$0xff] }
  0xf5   :  { %v766_v60 = vadd.f32 %v2173_v56, %v738_v34  ;;  %v767_v25 = vadd.f32 %v2176_v22, %v739_v51  ;;  %v788_v62 = vmul.f32 %v775_v50, %v2282_v29  ;;  %v789_v11 = vmul.f32 %v779_v27, %v2282_v29 }
  0xf6   :  { %v790_v55 = vmul.f32 %v783_v1, %v2282_v29  ;;  %v791_v30 = vmul.f32 %v787_v39, %v2282_v29  ;;  %v803_v44 = vrot.slane %v2113_v32, %v2656_v48  ;;  %v807_v61 = vrot.slane %v2124_v57, %v2656_v48 }
  0xf7   :  { %v792_v43 = vadd.f32 %v788_v62, %v764_v42  ;;  %v793_v45 = vadd.f32 %v789_v11, %v765_v52  ;;  %v811_v56 = vrot.slane %v2131_v46, %v2656_v48  ;;  %v815_v22 = vrot.slane %v2141_v12, %v2656_v48  ;;  %v2658_v11 = vld [vmem:[#allocation20_spill] sm:$0xff] }
  0xf8   :  { %v794_v3 = vadd.f32 %v790_v55, %v766_v60  ;;  %v795_v7 = vadd.f32 %v791_v30, %v767_v25  ;;  %v816_v59 = vmul.f32 %v803_v44, %v798_v15  ;;  %v817_v16 = vmul.f32 %v807_v61, %v798_v15  ;;  %v938_v50 = vpop.permute.xlu1 %937  ;;  %v2657_v25 = vld [vmem:[#allocation19_spill] sm:$0xff] }
  0xf9   :  { %v818_v23 = vmul.f32 %v811_v56, %v798_v15  ;;  %v819_v29 = vmul.f32 %v815_v22, %v798_v15  ;;  %v859_v24 = vrot.slane %v2113_v32, %v2010_v10  ;;  %v863_v38 = vrot.slane %v2124_v57, %v2010_v10 }
  0xfa   :  { %v820_v21 = vadd.f32 %v816_v59, %v792_v43  ;;  %v821_v28 = vadd.f32 %v817_v16, %v793_v45  ;;  %v867_v27 = vrot.slane %v2131_v46, %v2010_v10  ;;  %v871_v34 = vrot.slane %v2141_v12, %v2010_v10  ;;  %v2659_v43 = vld [vmem:[#allocation21_spill] sm:$0xff] }
  0xfb   :  { %v1619_v51 = vpop.eup %1618  ;;  %v822_v1 = vadd.f32 %v818_v23, %v794_v3  ;;  %v823_v42 = vadd.f32 %v819_v29, %v795_v7  ;;  %v872_v52 = vmul.f32 %v859_v24, %v854_v40  ;;  %v873_v15 = vmul.f32 %v863_v38, %v854_v40 }
  0xfc   :  { %v1621_v39 = vpop.eup %1620  ;;  %v456_v60 = vadd.f32 1.0, %v1619_v51  ;;  %v848_v62 = vadd.f32 %v2657_v25, %v820_v21  ;;  %v849_v55 = vadd.f32 %v2658_v11, %v821_v28  ;;  %v874_v30 = vmul.f32 %v867_v27, %v854_v40 }
  0xfd   :  { %v1623_v44 = vpop.eup %1622  ;;  %v457_v61 = vadd.f32 1.0, %v1621_v39  ;;  %v850_v45 = vadd.f32 %v2659_v43, %v822_v1  ;;  %v851_v56 = vadd.f32 %v2230_v9, %v823_v42  ;;  %v875_v22 = vmul.f32 %v871_v34, %v854_v40  ;;  %v966_v23 = vpop.permute.xlu1 %965  ;;  %v2660_v43 = vld [vmem:[#allocation8_spill] sm:$0xff] }
  0xfe   :  { %v1625_v59 = vpop.eup %1624  ;;  %v458_v16 = vadd.f32 1.0, %v1623_v44  ;;  %1626 = vrcp.f32 %v456_v60  ;;  %v876_v3 = vadd.f32 %v872_v52, %v848_v62  ;;  %v877_v7 = vadd.f32 %v873_v15, %v849_v55 }
  0xff   :  { %v459_v29 = vadd.f32 1.0, %v1625_v59  ;;  %1628 = vrcp.f32 %v457_v61  ;;  %v878_v24 = vadd.f32 %v874_v30, %v850_v45  ;;  %v879_v38 = vadd.f32 %v875_v22, %v851_v56  ;;  %v1246_v61 = vpop.permute.xlu0 %1245  ;;  %v2663_v59 = vld [vmem:[#allocation24_spill] sm:$0xff] }
 0x100   :  { %1630 = vrcp.f32 %v458_v16  ;;  %v887_v21 = vrot.slane %v2113_v32, %v2016_v18  ;;  %v891_v28 = vrot.slane %v2124_v57, %v2016_v18  ;;  %v895_v9 = vrot.slane %v2131_v46, %v2016_v18 }
 0x101   :  { %1632 = vrcp.f32 %v459_v29  ;;  %v899_v40 = vrot.slane %v2141_v12, %v2016_v18  ;;  %v943_v27 = vrot.slane %v2113_v32, %v2019_v19  ;;  %v947_v34 = vrot.slane %v2124_v57, %v2019_v19 }
 0x102   :  { %v900_v51 = vmul.f32 %v887_v21, %v2371_v17  ;;  %v901_v1 = vmul.f32 %v891_v28, %v2371_v17  ;;  %v902_v42 = vmul.f32 %v895_v9, %v2371_v17  ;;  %v951_v52 = vrot.slane %v2131_v46, %v2019_v19  ;;  %v2419_v32 = vpop.permute.xlu1 %1021 }
 0x103   :  { %v903_v15 = vmul.f32 %v899_v40, %v2371_v17  ;;  %v955_v39 = vrot.slane %v2141_v12, %v2019_v19  ;;  %v956_v60 = vmul.f32 %v943_v27, %v938_v50  ;;  %v957_v25 = vmul.f32 %v947_v34, %v938_v50  ;;  %v2661_v17 = vld [vmem:[#allocation22_spill] sm:$0xff]  ;;  %v2662_v12 = vld [vmem:[#allocation23_spill] sm:$0xff] }
 0x104   :  { %v904_v62 = vadd.f32 %v900_v51, %v876_v3  ;;  %v905_v57 = vadd.f32 %v901_v1, %v877_v7  ;;  %v906_v11 = vadd.f32 %v902_v42, %v878_v24  ;;  %v958_v55 = vmul.f32 %v951_v52, %v938_v50  ;;  %v2664_v7 = vld [vmem:[#allocation25_spill] sm:$0xff] }
 0x105   :  { %v907_v30 = vadd.f32 %v903_v15, %v879_v38  ;;  %v959_v44 = vmul.f32 %v955_v39, %v938_v50  ;;  %v971_v45 = vrot.slane %v2147_v33, %v2660_v43  ;;  %v975_v46 = vrot.slane %v2152_v0, %v2660_v43 }
 0x106   :  { %v932_v56 = vadd.f32 %v2661_v17, %v904_v62  ;;  %v933_v22 = vadd.f32 %v2662_v12, %v905_v57  ;;  %v934_v16 = vadd.f32 %v2663_v59, %v906_v11  ;;  %v979_v3 = vrot.slane %v2160_v8, %v2660_v43 }
 0x107   :  { %v935_v29 = vadd.f32 %v2664_v7, %v907_v30  ;;  %v983_v50 = vrot.slane %v2170_v4, %v2660_v43  ;;  %v984_v24 = vmul.f32 %v971_v45, %v966_v23  ;;  %v985_v38 = vmul.f32 %v975_v46, %v966_v23  ;;  %v1050_v34 = vpop.permute.xlu1 %1049 }
 0x108   :  { %v1627_v21 = vpop.eup %1626  ;;  %v2437_v28 = vmul.f32 %v1179_v31, %v2300_v47  ;;  %v960_v9 = vadd.f32 %v956_v60, %v932_v56  ;;  %v961_v40 = vadd.f32 %v957_v25, %v933_v22  ;;  %v986_v27 = vmul.f32 %v979_v3, %v966_v23  ;;  %v2452_v25 = vpop.permute.xlu0 %1329 }
 0x109   :  { %v1629_v51 = vpop.eup %1628  ;;  %v2440_v1 = vmul.f32 %v1627_v21, %v2335_v37  ;;  %v962_v42 = vadd.f32 %v958_v55, %v934_v16  ;;  %v963_v52 = vadd.f32 %v959_v44, %v935_v29  ;;  %v987_v15 = vmul.f32 %v983_v50, %v966_v23 }
 0x10a   :  { %v1631_v39 = vpop.eup %1630  ;;  %v2443_v62 = vmul.f32 %v1629_v51, %v2337_v26  ;;  %v988_v57 = vadd.f32 %v984_v24, %v960_v9  ;;  %v989_v11 = vadd.f32 %v985_v38, %v961_v40  ;;  %v1027_v47 = vrot.slane %v2147_v33, %v2656_v48  ;;  %v2665_v51 = vld [vmem:[#allocation10_spill] sm:$0xff] }
 0x10b   :  { %v1633_v31 = vpop.eup %1632  ;;  %v2448_v60 = vmul.f32 %v1631_v39, %v2341_v13  ;;  %v1251_v37 = vrot.slane %v2440_v1, %v2656_v48  ;;  %v1335_v23 = vrot.slane %v2440_v1, %v2016_v18  ;;  %v990_v55 = vadd.f32 %v986_v27, %v962_v42 }
 0x10c   :  { %v2457_v26 = vmul.f32 %v1633_v31, %v2343_v58  ;;  %v1255_v30 = vrot.slane %v2443_v62, %v2656_v48  ;;  %v1339_v44 = vrot.slane %v2443_v62, %v2016_v18  ;;  %v991_v13 = vadd.f32 %v987_v15, %v963_v52  ;;  %v1106_v12 = vpop.permute.xlu1 %1105 }
 0x10d   :  { %v1259_v45 = vrot.slane %v2448_v60, %v2656_v48  ;;  %v2465_v46 = vmul.f32 %v1251_v37, %v1246_v61  ;;  %v1343_v17 = vrot.slane %v2448_v60, %v2016_v18  ;;  %v1016_v56 = vadd.f32 %v2264_v53, %v988_v57 }
 0x10e   :  { %v1263_v58 = vrot.slane %v2457_v26, %v2656_v48  ;;  %v2472_v22 = vmul.f32 %v1255_v30, %v1246_v61  ;;  %v1347_v59 = vrot.slane %v2457_v26, %v2016_v18  ;;  %v2477_v16 = vmul.f32 %v1335_v23, %v2452_v25 }
 0x10f   :  { %v2479_v3 = vmul.f32 %v1259_v45, %v1246_v61  ;;  %v2482_v7 = vmul.f32 %v1339_v44, %v2452_v25  ;;  %v2485_v29 = vmul.f32 %v1343_v17, %v2452_v25  ;;  %v1017_v53 = vadd.f32 %v2266_v36, %v989_v11 }
 0x110   :  { %v2488_v50 = vmul.f32 %v1263_v58, %v1246_v61  ;;  %v1018_v24 = vadd.f32 %v2268_v2, %v990_v55  ;;  %v1019_v38 = vadd.f32 %v2270_v20, %v991_v13  ;;  %v1031_v21 = vrot.slane %v2152_v0, %v2656_v48 }
 0x111   :  { %v1035_v9 = vrot.slane %v2160_v8, %v2656_v48  ;;  %v1039_v40 = vrot.slane %v2170_v4, %v2656_v48  ;;  %v1040_v27 = vmul.f32 %v1027_v47, %v2419_v32  ;;  %v1055_v36 = vrot.slane %v2147_v33, %v2665_v51  ;;  %v1134_v52 = vpop.permute.xlu1 %1133 }
 0x112   :  { %v1041_v61 = vmul.f32 %v1031_v21, %v2419_v32  ;;  %v1059_v2 = vrot.slane %v2152_v0, %v2665_v51  ;;  %v1063_v20 = vrot.slane %v2160_v8, %v2665_v51  ;;  %v1067_v42 = vrot.slane %v2170_v4, %v2665_v51 }
 0x113   :  { %v1042_v15 = vmul.f32 %v1035_v9, %v2419_v32  ;;  %v1043_v48 = vmul.f32 %v1039_v40, %v2419_v32  ;;  %v1044_v39 = vadd.f32 %v1040_v27, %v1016_v56  ;;  %v1068_v57 = vmul.f32 %v1055_v36, %v1050_v34 }
 0x114   :  { %v1045_v11 = vadd.f32 %v1041_v61, %v1017_v53  ;;  %v1069_v47 = vmul.f32 %v1059_v2, %v1050_v34  ;;  %v1070_v31 = vmul.f32 %v1063_v20, %v1050_v34  ;;  %v1071_v37 = vmul.f32 %v1067_v42, %v1050_v34  ;;  %v2666_v2 = vld [vmem:[#allocation14_spill] sm:$0xff] }
 0x115   :  { %v1046_v23 = vadd.f32 %v1042_v15, %v1018_v24  ;;  %v1047_v55 = vadd.f32 %v1043_v48, %v1019_v38  ;;  %v1072_v30 = vadd.f32 %v1068_v57, %v1044_v39  ;;  %v1111_v44 = vrot.slane %v2147_v33, %v2016_v18 }
 0x116   :  { %v1073_v13 = vadd.f32 %v1069_v47, %v1045_v11  ;;  %v1115_v45 = vrot.slane %v2152_v0, %v2016_v18  ;;  %v1119_v17 = vrot.slane %v2160_v8, %v2016_v18  ;;  %v1123_v32 = vrot.slane %v2170_v4, %v2016_v18  ;;  %v1190_v24 = vpop.permute.xlu1 %1189 }
 0x117   :  { %v1074_v56 = vadd.f32 %v1070_v31, %v1046_v23  ;;  %v1075_v58 = vadd.f32 %v1071_v37, %v1047_v55  ;;  %v1100_v34 = vadd.f32 %v2284_v41, %v1072_v30  ;;  %v1124_v53 = vmul.f32 %v1111_v44, %v1106_v12 }
 0x118   :  { %v1101_v38 = vadd.f32 %v2286_v63, %v1073_v13  ;;  %v1125_v21 = vmul.f32 %v1115_v45, %v1106_v12  ;;  %v1126_v9 = vmul.f32 %v1119_v17, %v1106_v12  ;;  %v1127_v40 = vmul.f32 %v1123_v32, %v1106_v12 }
 0x119   :  { %v1102_v27 = vadd.f32 %v2292_v6, %v1074_v56  ;;  %v1103_v36 = vadd.f32 %v2302_v49, %v1075_v58  ;;  %v1128_v61 = vadd.f32 %v1124_v53, %v1100_v34  ;;  %v1139_v20 = vrot.slane %v2147_v33, %v2666_v2 }
 0x11a   :  { %v1129_v42 = vadd.f32 %v1125_v21, %v1101_v38  ;;  %v1143_v15 = vrot.slane %v2152_v0, %v2666_v2  ;;  %v1147_v41 = vrot.slane %v2160_v8, %v2666_v2  ;;  %v1151_v63 = vrot.slane %v2170_v4, %v2666_v2 }
 0x11b   :  { %v1130_v48 = vadd.f32 %v1126_v9, %v1102_v27  ;;  %v1131_v12 = vadd.f32 %v1127_v40, %v1103_v36  ;;  %v1152_v39 = vmul.f32 %v1139_v20, %v1134_v52  ;;  %v1195_v6 = vrot.slane %v2440_v1, %v2660_v43  ;;  %v1218_v47 = vpop.permute.xlu1 %1217 }
 0x11c   :  { %v1153_v49 = vmul.f32 %v1143_v15, %v1134_v52  ;;  %v1154_v57 = vmul.f32 %v1147_v41, %v1134_v52  ;;  %v1155_v11 = vmul.f32 %v1151_v63, %v1134_v52  ;;  %v1199_v33 = vrot.slane %v2443_v62, %v2660_v43 }
 0x11d   :  { %v1156_v0 = vadd.f32 %v1152_v39, %v1128_v61  ;;  %v1203_v8 = vrot.slane %v2448_v60, %v2660_v43  ;;  %v1207_v4 = vrot.slane %v2457_v26, %v2660_v43  ;;  %v1208_v31 = vmul.f32 %v1195_v6, %v1190_v24 }
 0x11e   :  { %v1157_v37 = vadd.f32 %v1153_v49, %v1129_v42  ;;  %v1158_v23 = vadd.f32 %v1154_v57, %v1130_v48  ;;  %v1159_v55 = vadd.f32 %v1155_v11, %v1131_v12  ;;  %v1209_v30 = vmul.f32 %v1199_v33, %v1190_v24 }
 0x11f   :  { %v1184_v44 = vadd.f32 %v2317_v14, %v1156_v0  ;;  %v1210_v13 = vmul.f32 %v1203_v8, %v1190_v24  ;;  %v1211_v52 = vmul.f32 %v1207_v4, %v1190_v24  ;;  %v1223_v45 = vrot.slane %v2440_v1, %v1830_v35 }
 0x120   :  { %v1185_v17 = vadd.f32 %v2320_v5, %v1157_v37  ;;  %v1186_v32 = vadd.f32 %v2323_v54, %v1158_v23  ;;  %v1187_v56 = vadd.f32 %v2437_v28, %v1159_v55  ;;  %v1227_v43 = vrot.slane %v2443_v62, %v1830_v35  ;;  %v1274_v24 = vpop.permute.xlu1 %1273 }
 0x121   :  { %v1212_v58 = vadd.f32 %v1208_v31, %v1184_v44  ;;  %v1231_v34 = vrot.slane %v2448_v60, %v1830_v35  ;;  %v1235_v14 = vrot.slane %v2457_v26, %v1830_v35  ;;  %v1236_v53 = vmul.f32 %v1223_v45, %v1218_v47 }
 0x122   :  { %v1213_v38 = vadd.f32 %v1209_v30, %v1185_v17  ;;  %v1214_v21 = vadd.f32 %v1210_v13, %v1186_v32  ;;  %v1215_v9 = vadd.f32 %v1211_v52, %v1187_v56  ;;  %v1237_v5 = vmul.f32 %v1227_v43, %v1218_v47 }
 0x123   :  { %v1238_v40 = vmul.f32 %v1231_v34, %v1218_v47  ;;  %v1239_v54 = vmul.f32 %v1235_v14, %v1218_v47  ;;  %v1240_v27 = vadd.f32 %v1236_v53, %v1212_v58  ;;  %v1279_v28 = vrot.slane %v2440_v1, %v2665_v51 }
 0x124   :  { %v1241_v36 = vadd.f32 %v1237_v5, %v1213_v38  ;;  %v1283_v61 = vrot.slane %v2443_v62, %v2665_v51  ;;  %v1287_v20 = vrot.slane %v2448_v60, %v2665_v51  ;;  %v1291_v35 = vrot.slane %v2457_v26, %v2665_v51 }
 0x125   :  { %v1242_v42 = vadd.f32 %v1238_v40, %v1214_v21  ;;  %v1243_v15 = vadd.f32 %v1239_v54, %v1215_v9  ;;  %v1268_v41 = vadd.f32 %v2465_v46, %v1240_v27  ;;  %v1292_v63 = vmul.f32 %v1279_v28, %v1274_v24  ;;  %v1302_v49 = vpop.permute.xlu1 %1301 }
 0x126   :  { %v1269_v48 = vadd.f32 %v2472_v22, %v1241_v36  ;;  %v1293_v12 = vmul.f32 %v1283_v61, %v1274_v24  ;;  %v1294_v39 = vmul.f32 %v1287_v20, %v1274_v24  ;;  %v1295_v6 = vmul.f32 %v1291_v35, %v1274_v24 }
 0x127   :  { %v1351_v57 = vmul.f32 %v1347_v59, %v2452_v25  ;;  %v1270_v11 = vadd.f32 %v2479_v3, %v1242_v42  ;;  %v1271_v51 = vadd.f32 %v2488_v50, %v1243_v15  ;;  %v1307_v33 = vrot.slane %v2440_v1, %v2010_v10 }
 0x128   :  { %v1296_v46 = vadd.f32 %v1292_v63, %v1268_v41  ;;  %v1311_v22 = vrot.slane %v2443_v62, %v2010_v10  ;;  %v1315_v47 = vrot.slane %v2448_v60, %v2010_v10  ;;  %v1319_v0 = vrot.slane %v2457_v26, %v2010_v10 }
 0x129   :  { %v1297_v8 = vadd.f32 %v1293_v12, %v1269_v48  ;;  %v1298_v18 = vadd.f32 %v1294_v39, %v1270_v11  ;;  %v1299_v25 = vadd.f32 %v1295_v6, %v1271_v51  ;;  %v1320_v59 = vmul.f32 %v1307_v33, %v1302_v49 }
 0x12a   :  { %v1321_v3 = vmul.f32 %v1311_v22, %v1302_v49  ;;  %v1322_v4 = vmul.f32 %v1315_v47, %v1302_v49  ;;  %v1323_v50 = vmul.f32 %v1319_v0, %v1302_v49  ;;  %v1363_v31 = vrot.slane %v2440_v1, %v2666_v2  ;;  %v1358_v23 = vpop.permute.xlu1 %1357 }
 0x12b   :  { %v1324_v37 = vadd.f32 %v1320_v59, %v1296_v46  ;;  %v1367_v55 = vrot.slane %v2443_v62, %v2666_v2  ;;  %v1371_v30 = vrot.slane %v2448_v60, %v2666_v2  ;;  %v1375_v10 = vrot.slane %v2457_v26, %v2666_v2 }
 0x12c   :  { %v1325_v44 = vadd.f32 %v1321_v3, %v1297_v8  ;;  %v1326_v13 = vadd.f32 %v1322_v4, %v1298_v18  ;;  %v1327_v52 = vadd.f32 %v1323_v50, %v1299_v25  ;;  %v1376_v45 = vmul.f32 %v1363_v31, %v1358_v23 }
 0x12d   :  { %v1377_v17 = vmul.f32 %v1367_v55, %v1358_v23  ;;  %v1378_v32 = vmul.f32 %v1371_v30, %v1358_v23  ;;  %v1379_v56 = vmul.f32 %v1375_v10, %v1358_v23  ;;  %v1352_v43 = vadd.f32 %v2477_v16, %v1324_v37 }
 0x12e   :  { %v1353_v58 = vadd.f32 %v2482_v7, %v1325_v44  ;;  %v1354_v34 = vadd.f32 %v2485_v29, %v1326_v13  ;;  %v1355_v14 = vadd.f32 %v1351_v57, %v1327_v52  ;;  %v1391_v53 = vrot.slane %v2440_v1, %v2019_v19 }
 0x12f   :  { %v1395_v2 = vrot.slane %v2443_v62, %v2019_v19  ;;  %v1399_v24 = vrot.slane %v2448_v60, %v2019_v19  ;;  %v1403_v38 = vrot.slane %v2457_v26, %v2019_v19  ;;  %v1386_v21 = vpop.permute.xlu1 %1385  ;;  %v1380_v9 = vadd.f32 %v1376_v45, %v1352_v43  ;;  %v1634_v60 = vld [vmem:[%s2612_s1] sm:$0xff]  ;;  %v1635_v26 = vld [vmem:[%s2612_s1 + $0x8] sm:$0xff] }
 0x130   :  { %v1381_v16 = vadd.f32 %v1377_v17, %v1353_v58  ;;  %v1382_v5 = vadd.f32 %v1378_v32, %v1354_v34  ;;  %v1383_v7 = vadd.f32 %v1379_v56, %v1355_v14  ;;  %v1404_v40 = vmul.f32 %v1391_v53, %v1386_v21 }
 0x131   :  { %v1405_v29 = vmul.f32 %v1395_v2, %v1386_v21  ;;  %v1406_v54 = vmul.f32 %v1399_v24, %v1386_v21  ;;  %v1407_v27 = vmul.f32 %v1403_v38, %v1386_v21 }
 0x132   :  { %v1408_v28 = vadd.f32 %v1404_v40, %v1380_v9 }
 0x133   :  { %v1409_v1 = vadd.f32 %v1405_v29, %v1381_v16  ;;  %v1410_v36 = vadd.f32 %v1406_v54, %v1382_v5  ;;  %v1411_v61 = vadd.f32 %v1407_v27, %v1383_v7 }
 0x135   :  { %v1416_v62 = vcombine.low %v1408_v28, %v1409_v1  ;;  %v1417_v20 = vcombine.low %v1410_v36, %v1411_v61 }
 0x137   :  { %v1420_v19 = vsub.f32 %v1634_v60, %v1416_v62  ;;  %v1421_v35 = vsub.f32 %v1635_v26, %v1417_v20 }
 0x139   :  { %v1422_v42 = vand.u32 2147483647, %v1420_v19  ;;  %v1423_v15 = vand.u32 2147483647, %v1421_v35 }
 0x13b   :  { %v1426_v41 = vcombine.high %v1422_v42, %v1422_v42  ;;  %v1427_v63 = vcombine.high %v1423_v15, %v1423_v15  ;;  %v1431_v48 = vsel %vm1430_vm0, %v1422_v42, 0.0  ;;  %v1434_v6 = vsel %vm1430_vm0, %v1423_v15, 0.0 }
 0x13d   :  { %v1432_v12 = vsel %vm1430_vm0, %v1426_v41, 0.0  ;;  %v1436_v57 = vsel %vm1430_vm0, %v1427_v63, 0.0 }
 0x13e   :  { %v1433_v39 = vadd.f32 %v1432_v12, %v1431_v48 }
 0x140   :  { %v1435_v49 = vadd.f32 %v1434_v6, %v1433_v39 }
 0x142   :  { %v1437_v11 = vadd.f32 %v1436_v57, %v1435_v49 }
 0x144   :  { %1438 = vadd.xlane.f32.xlu0 %v1437_v11 }
 0x1d1   :  { %v1439_v51 = vpop.xlane.xlu0 %1438 }
 0x1d2   :  { %v1440_v33 = vrot.slane %v1439_v51, 4 }
 0x1d4   :  { %v1441_v46 = vadd.f32 %v1440_v33, %v1439_v51 }
 0x1d6   :  { %v1442_v22 = vrot.slane %v1441_v46, 2 }
 0x1d8   :  { %v1443_v47 = vadd.f32 %v1442_v22, %v1441_v46 }
 0x1da   :  { %v1444_v0 = vrot.slane %v1443_v47, 1 }
 0x1dc   :  { %v1445_v8 = vadd.f32 %v1444_v0, %v1443_v47 }
 0x1de   :  { %1480 = vpush %v1445_v8 }
 0x20f   :  { %s1481_s1 = spop %1480 }
 0x210   :  { %s1447_s18 = smul.f32 0.00048828125, %s1481_s1 }
 0x212   :  { %1449 = sst [smem:[#allocation5]] %s1447_s18 }
 0x213   :  { %1667 = shalt.err (!%p1664_p10)
}
 0x214   :  { %s1707_s25 = smov [#allocation5]  }
 0x215   :  { %1457 = dma.smem_to_hbm %s1707_s25, 16, %s2619_s8, [#allocation4]  }
 0x216   :  { %1670 = dma.done.wait [#allocation4], 16  }
 0x217   :  { %1671 = vsyncadd [#allocation4], 4294967280 }
 0x218   :  { %1461 = sfence }
 0x219   :  { %1462 = vsyncpa [#allocation3], 1 }
 0x21a   :  { %1463 = vsyncpa [#allocation4], 1 }

</bundles_post_ra>
